<compile_context>
chip_gen: v6e
topology: v6e:2x2x1
jax: 0.10.0
libtpu: 0.0.40
codegen_flags: <defaults>
</compile_context>

<pallas_src>
import functools

import jax
import jax.numpy as jnp
from jax.experimental import pallas as pl
from jax.experimental.pallas import tpu as pltpu

HID = 8  # hidden width of the vector field g


def _num_rk4_steps(tf, h):
    """Exact trip count of `t = 0; while t <= tf: ...; t += h`.

    Replicates the PyTorch reference's Python-float (float64) accumulation so
    the trip count matches for every (t, step) pair, not just nice ones.
    """
    t = 0.0
    n = 0
    while t <= tf:
        n += 1
        t = t + h
        if n > 1_000_000:  # safety against pathological step sizes
            break
    return n


def _resnet_kernel(scal_ref, xt_ref, w1t_ref, b1t_ref, w2h_ref,
                   logits_ref, probas_ref, *, n_steps):
    """Whole forward pass for one batch tile, lane-major (batch -> lanes).

    Shapes (n = TILE_N lanes):
      scal_ref [F + 1 + F*F + F]  SMEM: [h*par3 (F), h*par5, finalW (F*F), finalb (F)]
      xt_ref   [F, n]      w1t_ref [HID, F]    b1t_ref [HID, 1]
      w2h_ref  [HID, F]    (= h * par4 * par2, pre-folded)
      logits_ref / probas_ref  [F, n]
    """
    fdim, n = xt_ref.shape
    hdim = w1t_ref.shape[0]

    # ---- SMEM scalars: splat into vector ops, pin no vregs ----------------
    b2h = [scal_ref[f] for f in range(fdim)]                       # h * par3
    p5h = scal_ref[fdim]                                           # h * par5
    wfs = [[scal_ref[fdim + 1 + o * fdim + i] for i in range(fdim)]
           for o in range(fdim)]                                   # finalLayer.weight
    bfs = [scal_ref[fdim + 1 + fdim * fdim + o] for o in range(fdim)]

    # ---- hoisted loop-invariant lane-dense slabs (built ONCE) -------------
    # 2 + 2 + 1 = 5 slabs of [HID, n]  (n<=256 => <=10 vregs live in the loop).
    w1c = [jnp.broadcast_to(w1t_ref[:, i:i + 1], (hdim, n)) for i in range(fdim)]
    w2r = [jnp.broadcast_to(w2h_ref[:, f:f + 1], (hdim, n)) for f in range(fdim)]
    b1b = jnp.broadcast_to(b1t_ref[...], (hdim, n))

    # carried state: F separate lane-dense [1, n] rows
    y = [xt_ref[i:i + 1, :].astype(jnp.float32) for i in range(fdim)]

    def gh(yy):
        """Returns h * g(yy); h and par4 are pre-folded into the constants."""
        # layer 1: 2 sublane broadcasts + full-vreg MADs, one tanh EUP slab
        pre = b1b
        for i in range(fdim):
            pre = pre + w1c[i] * yy[i]
        hdn = jnp.tanh(pre)                                        # [HID, n]
        # layer 2: per output feature, full [HID, n] mul + ONE sublane reduce
        out = []
        for f in range(fdim):
            of = jnp.sum(w2r[f] * hdn, axis=0, keepdims=True)      # [1, n]
            out.append(of + b2h[f] + p5h * yy[f])
        return out

    # ---- RK4 integration, fully unrolled (n_steps is a static Python int) --
    for _ in range(n_steps):
        k1 = gh(y)
        k2 = gh([y[i] + 0.5 * k1[i] for i in range(fdim)])
        k3 = gh([y[i] + 0.5 * k2[i] for i in range(fdim)])
        k4 = gh([y[i] + k3[i] for i in range(fdim)])
        y = [y[i] + (k1[i] + 2.0 * k2[i] + 2.0 * k3[i] + k4[i]) * (1.0 / 6.0)
             for i in range(fdim)]

    # ---- finalLayer (Linear(F,F)): pure SMEM-scalar splats, AFTER the loop --
    logits = []
    for o in range(fdim):
        acc = wfs[o][0] * y[0]
        for i in range(1, fdim):
            acc = acc + wfs[o][i] * y[i]
        acc = acc + bfs[o]
        logits.append(acc)
        logits_ref[o:o + 1, :] = acc                               # lane-dense store

    # ---- softmax over the feature axis (F tiny -> unrolled row ops) --------
    m = logits[0]
    for o in range(1, fdim):
        m = jnp.maximum(m, logits[o])
    e = [jnp.exp(logits[o] - m) for o in range(fdim)]
    s = e[0]
    for o in range(1, fdim):
        s = s + e[o]
    inv = pl.reciprocal(s)            # exact (approx would risk the 1e-5 check)
    for o in range(fdim):
        probas_ref[o:o + 1, :] = e[o] * inv


def resnet_forward(x, params, step, t=10):
    """Mirror of ResNet.forward(x, t): rk4_solver(g, x, 0, 0.1*t, step) -> Linear -> softmax."""
    p0, p1, p2, p3, p45, wf, bf = params
    h = float(step)
    n_steps = _num_rk4_steps(0.1 * t, h)
    N, F = x.shape
    hid = p0.shape[1]

    # ---- constant folding (once, outside the kernel) ------------------------
    p4 = p45[0]
    p5 = p45[1]
    w1t = p0.T.astype(jnp.float32)                     # [HID, F]
    b1t = p1.T.astype(jnp.float32)                     # [HID, 1]
    w2h = ((h * p4) * p2).astype(jnp.float32)          # [HID, F], h*par4 folded
    scal = jnp.concatenate([
        (h * p3).reshape(-1),                          # h*par3            (F)
        (h * p5).reshape(1),                           # h*par5            (1)
        wf.reshape(-1),                                # finalLayer.weight (F*F)
        bf.reshape(-1),                                # finalLayer.bias   (F)
    ]).astype(jnp.float32)

    # ---- lane-major layout + batch tiling (batch -> lanes) ------------------
    xt = x.T.astype(jnp.float32)                       # [F, N]
    TILE_N = 128 if N <= 128 else 256                  # 256 => 2 interleavable chains
    n_pad = -(-N // TILE_N) * TILE_N
    if n_pad != N:
        xt = jnp.pad(xt, ((0, 0), (0, n_pad - N)))     # padded lanes compute finite garbage
    n_tiles = n_pad // TILE_N

    kernel = functools.partial(_resnet_kernel, n_steps=n_steps)

    grid_spec = pltpu.PrefetchScalarGridSpec(
        num_scalar_prefetch=1,                         # scal -> SMEM
        grid=(n_tiles,),
        in_specs=[
            pl.BlockSpec((F, TILE_N), lambda i, s: (0, i)),
            pl.BlockSpec((hid, F), lambda i, s: (0, 0)),
            pl.BlockSpec((hid, 1), lambda i, s: (0, 0)),
            pl.BlockSpec((hid, F), lambda i, s: (0, 0)),
        ],
        out_specs=(
            pl.BlockSpec((F, TILE_N), lambda i, s: (0, i)),
            pl.BlockSpec((F, TILE_N), lambda i, s: (0, i)),
        ),
    )

    logits_t, probas_t = pl.pallas_call(
        kernel,
        out_shape=(jax.ShapeDtypeStruct((F, n_pad), jnp.float32),
                   jax.ShapeDtypeStruct((F, n_pad), jnp.float32)),
        grid_spec=grid_spec,
        compiler_params=pltpu.CompilerParams(dimension_semantics=("parallel",)),
    )(scal, xt, w1t, b1t, w2h)

    # back to the PyTorch (batch-major) convention; drop lane padding
    return logits_t[:, :N].T, probas_t[:, :N].T


def _reference_forward(x, params, step, t=10):
    """Pure-JAX reference (same math, no Pallas) for a correctness check."""
    p0, p1, p2, p3, p45, wf, bf = params
    p4, p5 = p45[0], p45[1]

    def g(y):
        return p4 * jnp.tanh(y @ p0 + p1) @ p2 + p3 + p5 * y

    n_steps = _num_rk4_steps(0.1 * t, float(step))
    h = float(step)
    y = x.astype(jnp.float32)
    for _ in range(n_steps):
        k1 = h * g(y)
        k2 = h * g(y + 0.5 * k1)
        k3 = h * g(y + 0.5 * k2)
        k4 = h * g(y + k3)
        y = y + (k1 + 2.0 * k2 + 2.0 * k3 + k4) * (1.0 / 6.0)
    logits = y @ wf.T + bf
    probas = jax.nn.softmax(logits, axis=1)
    return logits, probas


def init_params(key, f=2, hid=HID):
    ks = jax.random.split(key, 7)
    p0 = jax.random.normal(ks[0], (f, hid), jnp.float32) * 0.5      # par0
    p1 = jax.random.normal(ks[1], (1, hid), jnp.float32) * 0.1      # par1
    p2 = jax.random.normal(ks[2], (hid, f), jnp.float32) * 0.5      # par2
    p3 = jax.random.normal(ks[3], (1, f), jnp.float32) * 0.1        # par3
    p45 = jnp.array([0.7, -0.3], jnp.float32)                       # par4, par5
    wf = jax.random.normal(ks[4], (f, f), jnp.float32) * 0.5        # finalLayer.weight
    bf = jax.random.normal(ks[5], (1, f), jnp.float32) * 0.1        # finalLayer.bias
    return (p0, p1, p2, p3, p45, wf, bf)


if __name__ == "__main__":
    key = jax.random.PRNGKey(0)
    kx, kp = jax.random.split(key)

    N, F = 128, 2                     # batch of 128 points in R^2 (one lane tile)
    x = jax.random.normal(kx, (N, F), jnp.float32)
    params = init_params(kp, f=F, hid=HID)

    step = 0.25                       # RK4 step size h  -> 5 integration steps
    logits, probas = resnet_forward(x, params, step=step, t=10)
    jax.block_until_ready((logits, probas))

    ref_logits, ref_probas = _reference_forward(x, params, step=step, t=10)
    assert logits.shape == (N, F) and probas.shape == (N, F)
    assert jnp.allclose(logits, ref_logits, atol=1e-4, rtol=1e-4)
    assert jnp.allclose(probas, ref_probas, atol=1e-5, rtol=1e-4)
    assert bool(jnp.all(jnp.isfinite(probas)))

    print("KERNEL_OK")
</pallas_src>

<mosaic_0001>
module attributes {stable_mosaic.version = 11 : i64} {
  func.func @_resnet_kernel(%arg0: i32, %arg1: memref<9xf32, #tpu.memory_space<smem>>, %arg2: memref<2x128xf32, #tpu.memory_space<vmem>>, %arg3: memref<8x2xf32, #tpu.memory_space<vmem>>, %arg4: memref<8x1xf32, #tpu.memory_space<vmem>>, %arg5: memref<8x2xf32, #tpu.memory_space<vmem>>, %arg6: memref<2x128xf32, #tpu.memory_space<vmem>>, %arg7: memref<2x128xf32, #tpu.memory_space<vmem>>) attributes {dimension_semantics = [#tpu.dimension_semantics<parallel>], iteration_bounds = array<i64: 1>, scalar_prefetch = 1 : i64, scratch_operands = 0 : i64, tpu.core_type = #tpu.core_type<tc>, window_params = [{transform_indices = @transform_0, window_bounds = array<i64: 2, 128>}, {pipeline_mode = #tpu.pipeline_mode<synchronous>, transform_indices = @transform_1, window_bounds = array<i64: 8, 2>}, {pipeline_mode = #tpu.pipeline_mode<synchronous>, transform_indices = @transform_2, window_bounds = array<i64: 8, 1>}, {pipeline_mode = #tpu.pipeline_mode<synchronous>, transform_indices = @transform_3, window_bounds = array<i64: 8, 2>}, {transform_indices = @transform_4, window_bounds = array<i64: 2, 128>}, {transform_indices = @transform_5, window_bounds = array<i64: 2, 128>}]} {
    %c0 = arith.constant 0 : index
    %0 = memref.load %arg1[%c0] : memref<9xf32, #tpu.memory_space<smem>>
    %c1 = arith.constant 1 : index
    %1 = memref.load %arg1[%c1] : memref<9xf32, #tpu.memory_space<smem>>
    %c2 = arith.constant 2 : index
    %2 = memref.load %arg1[%c2] : memref<9xf32, #tpu.memory_space<smem>>
    %c3 = arith.constant 3 : index
    %3 = memref.load %arg1[%c3] : memref<9xf32, #tpu.memory_space<smem>>
    %c4 = arith.constant 4 : index
    %4 = memref.load %arg1[%c4] : memref<9xf32, #tpu.memory_space<smem>>
    %c5 = arith.constant 5 : index
    %5 = memref.load %arg1[%c5] : memref<9xf32, #tpu.memory_space<smem>>
    %c6 = arith.constant 6 : index
    %6 = memref.load %arg1[%c6] : memref<9xf32, #tpu.memory_space<smem>>
    %c7 = arith.constant 7 : index
    %7 = memref.load %arg1[%c7] : memref<9xf32, #tpu.memory_space<smem>>
    %c8 = arith.constant 8 : index
    %8 = memref.load %arg1[%c8] : memref<9xf32, #tpu.memory_space<smem>>
    %c0_0 = arith.constant 0 : index
    %c0_1 = arith.constant 0 : index
    %9 = vector.load %arg3[%c0_0, %c0_1] : memref<8x2xf32, #tpu.memory_space<vmem>>, vector<8x1xf32>
    %10 = vector.shape_cast %9 : vector<8x1xf32> to vector<8x1xf32>
    %11 = vector.broadcast %10 : vector<8x1xf32> to vector<8x128xf32>
    %c0_2 = arith.constant 0 : index
    %c1_3 = arith.constant 1 : index
    %12 = vector.load %arg3[%c0_2, %c1_3] : memref<8x2xf32, #tpu.memory_space<vmem>>, vector<8x1xf32>
    %13 = vector.shape_cast %12 : vector<8x1xf32> to vector<8x1xf32>
    %14 = vector.broadcast %13 : vector<8x1xf32> to vector<8x128xf32>
    %c0_4 = arith.constant 0 : index
    %c0_5 = arith.constant 0 : index
    %15 = vector.load %arg5[%c0_4, %c0_5] : memref<8x2xf32, #tpu.memory_space<vmem>>, vector<8x1xf32>
    %16 = vector.shape_cast %15 : vector<8x1xf32> to vector<8x1xf32>
    %17 = vector.broadcast %16 : vector<8x1xf32> to vector<8x128xf32>
    %c0_6 = arith.constant 0 : index
    %c1_7 = arith.constant 1 : index
    %18 = vector.load %arg5[%c0_6, %c1_7] : memref<8x2xf32, #tpu.memory_space<vmem>>, vector<8x1xf32>
    %19 = vector.shape_cast %18 : vector<8x1xf32> to vector<8x1xf32>
    %20 = vector.broadcast %19 : vector<8x1xf32> to vector<8x128xf32>
    %c0_8 = arith.constant 0 : index
    %c0_9 = arith.constant 0 : index
    %21 = vector.load %arg4[%c0_8, %c0_9] : memref<8x1xf32, #tpu.memory_space<vmem>>, vector<8x1xf32>
    %22 = vector.shape_cast %21 : vector<8x1xf32> to vector<8x1xf32>
    %23 = vector.broadcast %22 : vector<8x1xf32> to vector<8x128xf32>
    %c0_10 = arith.constant 0 : index
    %c0_11 = arith.constant 0 : index
    %24 = vector.load %arg2[%c0_10, %c0_11] : memref<2x128xf32, #tpu.memory_space<vmem>>, vector<1x128xf32>
    %c1_12 = arith.constant 1 : index
    %c0_13 = arith.constant 0 : index
    %25 = vector.load %arg2[%c1_12, %c0_13] : memref<2x128xf32, #tpu.memory_space<vmem>>, vector<1x128xf32>
    %26 = vector.broadcast %24 : vector<1x128xf32> to vector<8x128xf32>
    %27 = arith.mulf %11, %26 : vector<8x128xf32>
    %28 = arith.addf %23, %27 : vector<8x128xf32>
    %29 = vector.broadcast %25 : vector<1x128xf32> to vector<8x128xf32>
    %30 = arith.mulf %14, %29 : vector<8x128xf32>
    %31 = arith.addf %28, %30 : vector<8x128xf32>
    %32 = math.tanh %31 : vector<8x128xf32>
    %33 = arith.mulf %17, %32 : vector<8x128xf32>
    %cst = arith.constant dense<0.000000e+00> : vector<128xf32>
    %34 = vector.multi_reduction <add>, %33, %cst [0] : vector<8x128xf32> to vector<128xf32>
    %35 = vector.shape_cast %34 : vector<128xf32> to vector<1x128xf32>
    %36 = vector.broadcast %0 : f32 to vector<1x128xf32>
    %37 = arith.addf %35, %36 : vector<1x128xf32>
    %38 = vector.broadcast %2 : f32 to vector<1x128xf32>
    %39 = arith.mulf %38, %24 : vector<1x128xf32>
    %40 = arith.addf %37, %39 : vector<1x128xf32>
    %41 = arith.mulf %20, %32 : vector<8x128xf32>
    %cst_14 = arith.constant dense<0.000000e+00> : vector<128xf32>
    %42 = vector.multi_reduction <add>, %41, %cst_14 [0] : vector<8x128xf32> to vector<128xf32>
    %43 = vector.shape_cast %42 : vector<128xf32> to vector<1x128xf32>
    %44 = vector.broadcast %1 : f32 to vector<1x128xf32>
    %45 = arith.addf %43, %44 : vector<1x128xf32>
    %46 = vector.broadcast %2 : f32 to vector<1x128xf32>
    %47 = arith.mulf %46, %25 : vector<1x128xf32>
    %48 = arith.addf %45, %47 : vector<1x128xf32>
    %cst_15 = arith.constant 5.000000e-01 : f32
    %49 = vector.broadcast %cst_15 : f32 to vector<1x128xf32>
    %50 = arith.mulf %49, %40 : vector<1x128xf32>
    %51 = arith.addf %24, %50 : vector<1x128xf32>
    %cst_16 = arith.constant 5.000000e-01 : f32
    %52 = vector.broadcast %cst_16 : f32 to vector<1x128xf32>
    %53 = arith.mulf %52, %48 : vector<1x128xf32>
    %54 = arith.addf %25, %53 : vector<1x128xf32>
    %55 = vector.broadcast %51 : vector<1x128xf32> to vector<8x128xf32>
    %56 = arith.mulf %11, %55 : vector<8x128xf32>
    %57 = arith.addf %23, %56 : vector<8x128xf32>
    %58 = vector.broadcast %54 : vector<1x128xf32> to vector<8x128xf32>
    %59 = arith.mulf %14, %58 : vector<8x128xf32>
    %60 = arith.addf %57, %59 : vector<8x128xf32>
    %61 = math.tanh %60 : vector<8x128xf32>
    %62 = arith.mulf %17, %61 : vector<8x128xf32>
    %cst_17 = arith.constant dense<0.000000e+00> : vector<128xf32>
    %63 = vector.multi_reduction <add>, %62, %cst_17 [0] : vector<8x128xf32> to vector<128xf32>
    %64 = vector.shape_cast %63 : vector<128xf32> to vector<1x128xf32>
    %65 = vector.broadcast %0 : f32 to vector<1x128xf32>
    %66 = arith.addf %64, %65 : vector<1x128xf32>
    %67 = vector.broadcast %2 : f32 to vector<1x128xf32>
    %68 = arith.mulf %67, %51 : vector<1x128xf32>
    %69 = arith.addf %66, %68 : vector<1x128xf32>
    %70 = arith.mulf %20, %61 : vector<8x128xf32>
    %cst_18 = arith.constant dense<0.000000e+00> : vector<128xf32>
    %71 = vector.multi_reduction <add>, %70, %cst_18 [0] : vector<8x128xf32> to vector<128xf32>
    %72 = vector.shape_cast %71 : vector<128xf32> to vector<1x128xf32>
    %73 = vector.broadcast %1 : f32 to vector<1x128xf32>
    %74 = arith.addf %72, %73 : vector<1x128xf32>
    %75 = vector.broadcast %2 : f32 to vector<1x128xf32>
    %76 = arith.mulf %75, %54 : vector<1x128xf32>
    %77 = arith.addf %74, %76 : vector<1x128xf32>
    %cst_19 = arith.constant 5.000000e-01 : f32
    %78 = vector.broadcast %cst_19 : f32 to vector<1x128xf32>
    %79 = arith.mulf %78, %69 : vector<1x128xf32>
    %80 = arith.addf %24, %79 : vector<1x128xf32>
    %cst_20 = arith.constant 5.000000e-01 : f32
    %81 = vector.broadcast %cst_20 : f32 to vector<1x128xf32>
    %82 = arith.mulf %81, %77 : vector<1x128xf32>
    %83 = arith.addf %25, %82 : vector<1x128xf32>
    %84 = vector.broadcast %80 : vector<1x128xf32> to vector<8x128xf32>
    %85 = arith.mulf %11, %84 : vector<8x128xf32>
    %86 = arith.addf %23, %85 : vector<8x128xf32>
    %87 = vector.broadcast %83 : vector<1x128xf32> to vector<8x128xf32>
    %88 = arith.mulf %14, %87 : vector<8x128xf32>
    %89 = arith.addf %86, %88 : vector<8x128xf32>
    %90 = math.tanh %89 : vector<8x128xf32>
    %91 = arith.mulf %17, %90 : vector<8x128xf32>
    %cst_21 = arith.constant dense<0.000000e+00> : vector<128xf32>
    %92 = vector.multi_reduction <add>, %91, %cst_21 [0] : vector<8x128xf32> to vector<128xf32>
    %93 = vector.shape_cast %92 : vector<128xf32> to vector<1x128xf32>
    %94 = vector.broadcast %0 : f32 to vector<1x128xf32>
    %95 = arith.addf %93, %94 : vector<1x128xf32>
    %96 = vector.broadcast %2 : f32 to vector<1x128xf32>
    %97 = arith.mulf %96, %80 : vector<1x128xf32>
    %98 = arith.addf %95, %97 : vector<1x128xf32>
    %99 = arith.mulf %20, %90 : vector<8x128xf32>
    %cst_22 = arith.constant dense<0.000000e+00> : vector<128xf32>
    %100 = vector.multi_reduction <add>, %99, %cst_22 [0] : vector<8x128xf32> to vector<128xf32>
    %101 = vector.shape_cast %100 : vector<128xf32> to vector<1x128xf32>
    %102 = vector.broadcast %1 : f32 to vector<1x128xf32>
    %103 = arith.addf %101, %102 : vector<1x128xf32>
    %104 = vector.broadcast %2 : f32 to vector<1x128xf32>
    %105 = arith.mulf %104, %83 : vector<1x128xf32>
    %106 = arith.addf %103, %105 : vector<1x128xf32>
    %107 = arith.addf %24, %98 : vector<1x128xf32>
    %108 = arith.addf %25, %106 : vector<1x128xf32>
    %109 = vector.broadcast %107 : vector<1x128xf32> to vector<8x128xf32>
    %110 = arith.mulf %11, %109 : vector<8x128xf32>
    %111 = arith.addf %23, %110 : vector<8x128xf32>
    %112 = vector.broadcast %108 : vector<1x128xf32> to vector<8x128xf32>
    %113 = arith.mulf %14, %112 : vector<8x128xf32>
    %114 = arith.addf %111, %113 : vector<8x128xf32>
    %115 = math.tanh %114 : vector<8x128xf32>
    %116 = arith.mulf %17, %115 : vector<8x128xf32>
    %cst_23 = arith.constant dense<0.000000e+00> : vector<128xf32>
    %117 = vector.multi_reduction <add>, %116, %cst_23 [0] : vector<8x128xf32> to vector<128xf32>
    %118 = vector.shape_cast %117 : vector<128xf32> to vector<1x128xf32>
    %119 = vector.broadcast %0 : f32 to vector<1x128xf32>
    %120 = arith.addf %118, %119 : vector<1x128xf32>
    %121 = vector.broadcast %2 : f32 to vector<1x128xf32>
    %122 = arith.mulf %121, %107 : vector<1x128xf32>
    %123 = arith.addf %120, %122 : vector<1x128xf32>
    %124 = arith.mulf %20, %115 : vector<8x128xf32>
    %cst_24 = arith.constant dense<0.000000e+00> : vector<128xf32>
    %125 = vector.multi_reduction <add>, %124, %cst_24 [0] : vector<8x128xf32> to vector<128xf32>
    %126 = vector.shape_cast %125 : vector<128xf32> to vector<1x128xf32>
    %127 = vector.broadcast %1 : f32 to vector<1x128xf32>
    %128 = arith.addf %126, %127 : vector<1x128xf32>
    %129 = vector.broadcast %2 : f32 to vector<1x128xf32>
    %130 = arith.mulf %129, %108 : vector<1x128xf32>
    %131 = arith.addf %128, %130 : vector<1x128xf32>
    %cst_25 = arith.constant 2.000000e+00 : f32
    %132 = vector.broadcast %cst_25 : f32 to vector<1x128xf32>
    %133 = arith.mulf %132, %69 : vector<1x128xf32>
    %134 = arith.addf %40, %133 : vector<1x128xf32>
    %cst_26 = arith.constant 2.000000e+00 : f32
    %135 = vector.broadcast %cst_26 : f32 to vector<1x128xf32>
    %136 = arith.mulf %135, %98 : vector<1x128xf32>
    %137 = arith.addf %134, %136 : vector<1x128xf32>
    %138 = arith.addf %137, %123 : vector<1x128xf32>
    %cst_27 = arith.constant 0.166666672 : f32
    %139 = vector.broadcast %cst_27 : f32 to vector<1x128xf32>
    %140 = arith.mulf %138, %139 : vector<1x128xf32>
    %141 = arith.addf %24, %140 : vector<1x128xf32>
    %cst_28 = arith.constant 2.000000e+00 : f32
    %142 = vector.broadcast %cst_28 : f32 to vector<1x128xf32>
    %143 = arith.mulf %142, %77 : vector<1x128xf32>
    %144 = arith.addf %48, %143 : vector<1x128xf32>
    %cst_29 = arith.constant 2.000000e+00 : f32
    %145 = vector.broadcast %cst_29 : f32 to vector<1x128xf32>
    %146 = arith.mulf %145, %106 : vector<1x128xf32>
    %147 = arith.addf %144, %146 : vector<1x128xf32>
    %148 = arith.addf %147, %131 : vector<1x128xf32>
    %cst_30 = arith.constant 0.166666672 : f32
    %149 = vector.broadcast %cst_30 : f32 to vector<1x128xf32>
    %150 = arith.mulf %148, %149 : vector<1x128xf32>
    %151 = arith.addf %25, %150 : vector<1x128xf32>
    %152 = vector.broadcast %141 : vector<1x128xf32> to vector<8x128xf32>
    %153 = arith.mulf %11, %152 : vector<8x128xf32>
    %154 = arith.addf %23, %153 : vector<8x128xf32>
    %155 = vector.broadcast %151 : vector<1x128xf32> to vector<8x128xf32>
    %156 = arith.mulf %14, %155 : vector<8x128xf32>
    %157 = arith.addf %154, %156 : vector<8x128xf32>
    %158 = math.tanh %157 : vector<8x128xf32>
    %159 = arith.mulf %17, %158 : vector<8x128xf32>
    %cst_31 = arith.constant dense<0.000000e+00> : vector<128xf32>
    %160 = vector.multi_reduction <add>, %159, %cst_31 [0] : vector<8x128xf32> to vector<128xf32>
    %161 = vector.shape_cast %160 : vector<128xf32> to vector<1x128xf32>
    %162 = vector.broadcast %0 : f32 to vector<1x128xf32>
    %163 = arith.addf %161, %162 : vector<1x128xf32>
    %164 = vector.broadcast %2 : f32 to vector<1x128xf32>
    %165 = arith.mulf %164, %141 : vector<1x128xf32>
    %166 = arith.addf %163, %165 : vector<1x128xf32>
    %167 = arith.mulf %20, %158 : vector<8x128xf32>
    %cst_32 = arith.constant dense<0.000000e+00> : vector<128xf32>
    %168 = vector.multi_reduction <add>, %167, %cst_32 [0] : vector<8x128xf32> to vector<128xf32>
    %169 = vector.shape_cast %168 : vector<128xf32> to vector<1x128xf32>
    %170 = vector.broadcast %1 : f32 to vector<1x128xf32>
    %171 = arith.addf %169, %170 : vector<1x128xf32>
    %172 = vector.broadcast %2 : f32 to vector<1x128xf32>
    %173 = arith.mulf %172, %151 : vector<1x128xf32>
    %174 = arith.addf %171, %173 : vector<1x128xf32>
    %cst_33 = arith.constant 5.000000e-01 : f32
    %175 = vector.broadcast %cst_33 : f32 to vector<1x128xf32>
    %176 = arith.mulf %175, %166 : vector<1x128xf32>
    %177 = arith.addf %141, %176 : vector<1x128xf32>
    %cst_34 = arith.constant 5.000000e-01 : f32
    %178 = vector.broadcast %cst_34 : f32 to vector<1x128xf32>
    %179 = arith.mulf %178, %174 : vector<1x128xf32>
    %180 = arith.addf %151, %179 : vector<1x128xf32>
    %181 = vector.broadcast %177 : vector<1x128xf32> to vector<8x128xf32>
    %182 = arith.mulf %11, %181 : vector<8x128xf32>
    %183 = arith.addf %23, %182 : vector<8x128xf32>
    %184 = vector.broadcast %180 : vector<1x128xf32> to vector<8x128xf32>
    %185 = arith.mulf %14, %184 : vector<8x128xf32>
    %186 = arith.addf %183, %185 : vector<8x128xf32>
    %187 = math.tanh %186 : vector<8x128xf32>
    %188 = arith.mulf %17, %187 : vector<8x128xf32>
    %cst_35 = arith.constant dense<0.000000e+00> : vector<128xf32>
    %189 = vector.multi_reduction <add>, %188, %cst_35 [0] : vector<8x128xf32> to vector<128xf32>
    %190 = vector.shape_cast %189 : vector<128xf32> to vector<1x128xf32>
    %191 = vector.broadcast %0 : f32 to vector<1x128xf32>
    %192 = arith.addf %190, %191 : vector<1x128xf32>
    %193 = vector.broadcast %2 : f32 to vector<1x128xf32>
    %194 = arith.mulf %193, %177 : vector<1x128xf32>
    %195 = arith.addf %192, %194 : vector<1x128xf32>
    %196 = arith.mulf %20, %187 : vector<8x128xf32>
    %cst_36 = arith.constant dense<0.000000e+00> : vector<128xf32>
    %197 = vector.multi_reduction <add>, %196, %cst_36 [0] : vector<8x128xf32> to vector<128xf32>
    %198 = vector.shape_cast %197 : vector<128xf32> to vector<1x128xf32>
    %199 = vector.broadcast %1 : f32 to vector<1x128xf32>
    %200 = arith.addf %198, %199 : vector<1x128xf32>
    %201 = vector.broadcast %2 : f32 to vector<1x128xf32>
    %202 = arith.mulf %201, %180 : vector<1x128xf32>
    %203 = arith.addf %200, %202 : vector<1x128xf32>
    %cst_37 = arith.constant 5.000000e-01 : f32
    %204 = vector.broadcast %cst_37 : f32 to vector<1x128xf32>
    %205 = arith.mulf %204, %195 : vector<1x128xf32>
    %206 = arith.addf %141, %205 : vector<1x128xf32>
    %cst_38 = arith.constant 5.000000e-01 : f32
    %207 = vector.broadcast %cst_38 : f32 to vector<1x128xf32>
    %208 = arith.mulf %207, %203 : vector<1x128xf32>
    %209 = arith.addf %151, %208 : vector<1x128xf32>
    %210 = vector.broadcast %206 : vector<1x128xf32> to vector<8x128xf32>
    %211 = arith.mulf %11, %210 : vector<8x128xf32>
    %212 = arith.addf %23, %211 : vector<8x128xf32>
    %213 = vector.broadcast %209 : vector<1x128xf32> to vector<8x128xf32>
    %214 = arith.mulf %14, %213 : vector<8x128xf32>
    %215 = arith.addf %212, %214 : vector<8x128xf32>
    %216 = math.tanh %215 : vector<8x128xf32>
    %217 = arith.mulf %17, %216 : vector<8x128xf32>
    %cst_39 = arith.constant dense<0.000000e+00> : vector<128xf32>
    %218 = vector.multi_reduction <add>, %217, %cst_39 [0] : vector<8x128xf32> to vector<128xf32>
    %219 = vector.shape_cast %218 : vector<128xf32> to vector<1x128xf32>
    %220 = vector.broadcast %0 : f32 to vector<1x128xf32>
    %221 = arith.addf %219, %220 : vector<1x128xf32>
    %222 = vector.broadcast %2 : f32 to vector<1x128xf32>
    %223 = arith.mulf %222, %206 : vector<1x128xf32>
    %224 = arith.addf %221, %223 : vector<1x128xf32>
    %225 = arith.mulf %20, %216 : vector<8x128xf32>
    %cst_40 = arith.constant dense<0.000000e+00> : vector<128xf32>
    %226 = vector.multi_reduction <add>, %225, %cst_40 [0] : vector<8x128xf32> to vector<128xf32>
    %227 = vector.shape_cast %226 : vector<128xf32> to vector<1x128xf32>
    %228 = vector.broadcast %1 : f32 to vector<1x128xf32>
    %229 = arith.addf %227, %228 : vector<1x128xf32>
    %230 = vector.broadcast %2 : f32 to vector<1x128xf32>
    %231 = arith.mulf %230, %209 : vector<1x128xf32>
    %232 = arith.addf %229, %231 : vector<1x128xf32>
    %233 = arith.addf %141, %224 : vector<1x128xf32>
    %234 = arith.addf %151, %232 : vector<1x128xf32>
    %235 = vector.broadcast %233 : vector<1x128xf32> to vector<8x128xf32>
    %236 = arith.mulf %11, %235 : vector<8x128xf32>
    %237 = arith.addf %23, %236 : vector<8x128xf32>
    %238 = vector.broadcast %234 : vector<1x128xf32> to vector<8x128xf32>
    %239 = arith.mulf %14, %238 : vector<8x128xf32>
    %240 = arith.addf %237, %239 : vector<8x128xf32>
    %241 = math.tanh %240 : vector<8x128xf32>
    %242 = arith.mulf %17, %241 : vector<8x128xf32>
    %cst_41 = arith.constant dense<0.000000e+00> : vector<128xf32>
    %243 = vector.multi_reduction <add>, %242, %cst_41 [0] : vector<8x128xf32> to vector<128xf32>
    %244 = vector.shape_cast %243 : vector<128xf32> to vector<1x128xf32>
    %245 = vector.broadcast %0 : f32 to vector<1x128xf32>
    %246 = arith.addf %244, %245 : vector<1x128xf32>
    %247 = vector.broadcast %2 : f32 to vector<1x128xf32>
    %248 = arith.mulf %247, %233 : vector<1x128xf32>
    %249 = arith.addf %246, %248 : vector<1x128xf32>
    %250 = arith.mulf %20, %241 : vector<8x128xf32>
    %cst_42 = arith.constant dense<0.000000e+00> : vector<128xf32>
    %251 = vector.multi_reduction <add>, %250, %cst_42 [0] : vector<8x128xf32> to vector<128xf32>
    %252 = vector.shape_cast %251 : vector<128xf32> to vector<1x128xf32>
    %253 = vector.broadcast %1 : f32 to vector<1x128xf32>
    %254 = arith.addf %252, %253 : vector<1x128xf32>
    %255 = vector.broadcast %2 : f32 to vector<1x128xf32>
    %256 = arith.mulf %255, %234 : vector<1x128xf32>
    %257 = arith.addf %254, %256 : vector<1x128xf32>
    %cst_43 = arith.constant 2.000000e+00 : f32
    %258 = vector.broadcast %cst_43 : f32 to vector<1x128xf32>
    %259 = arith.mulf %258, %195 : vector<1x128xf32>
    %260 = arith.addf %166, %259 : vector<1x128xf32>
    %cst_44 = arith.constant 2.000000e+00 : f32
    %261 = vector.broadcast %cst_44 : f32 to vector<1x128xf32>
    %262 = arith.mulf %261, %224 : vector<1x128xf32>
    %263 = arith.addf %260, %262 : vector<1x128xf32>
    %264 = arith.addf %263, %249 : vector<1x128xf32>
    %cst_45 = arith.constant 0.166666672 : f32
    %265 = vector.broadcast %cst_45 : f32 to vector<1x128xf32>
    %266 = arith.mulf %264, %265 : vector<1x128xf32>
    %267 = arith.addf %141, %266 : vector<1x128xf32>
    %cst_46 = arith.constant 2.000000e+00 : f32
    %268 = vector.broadcast %cst_46 : f32 to vector<1x128xf32>
    %269 = arith.mulf %268, %203 : vector<1x128xf32>
    %270 = arith.addf %174, %269 : vector<1x128xf32>
    %cst_47 = arith.constant 2.000000e+00 : f32
    %271 = vector.broadcast %cst_47 : f32 to vector<1x128xf32>
    %272 = arith.mulf %271, %232 : vector<1x128xf32>
    %273 = arith.addf %270, %272 : vector<1x128xf32>
    %274 = arith.addf %273, %257 : vector<1x128xf32>
    %cst_48 = arith.constant 0.166666672 : f32
    %275 = vector.broadcast %cst_48 : f32 to vector<1x128xf32>
    %276 = arith.mulf %274, %275 : vector<1x128xf32>
    %277 = arith.addf %151, %276 : vector<1x128xf32>
    %278 = vector.broadcast %267 : vector<1x128xf32> to vector<8x128xf32>
    %279 = arith.mulf %11, %278 : vector<8x128xf32>
    %280 = arith.addf %23, %279 : vector<8x128xf32>
    %281 = vector.broadcast %277 : vector<1x128xf32> to vector<8x128xf32>
    %282 = arith.mulf %14, %281 : vector<8x128xf32>
    %283 = arith.addf %280, %282 : vector<8x128xf32>
    %284 = math.tanh %283 : vector<8x128xf32>
    %285 = arith.mulf %17, %284 : vector<8x128xf32>
    %cst_49 = arith.constant dense<0.000000e+00> : vector<128xf32>
    %286 = vector.multi_reduction <add>, %285, %cst_49 [0] : vector<8x128xf32> to vector<128xf32>
    %287 = vector.shape_cast %286 : vector<128xf32> to vector<1x128xf32>
    %288 = vector.broadcast %0 : f32 to vector<1x128xf32>
    %289 = arith.addf %287, %288 : vector<1x128xf32>
    %290 = vector.broadcast %2 : f32 to vector<1x128xf32>
    %291 = arith.mulf %290, %267 : vector<1x128xf32>
    %292 = arith.addf %289, %291 : vector<1x128xf32>
    %293 = arith.mulf %20, %284 : vector<8x128xf32>
    %cst_50 = arith.constant dense<0.000000e+00> : vector<128xf32>
    %294 = vector.multi_reduction <add>, %293, %cst_50 [0] : vector<8x128xf32> to vector<128xf32>
    %295 = vector.shape_cast %294 : vector<128xf32> to vector<1x128xf32>
    %296 = vector.broadcast %1 : f32 to vector<1x128xf32>
    %297 = arith.addf %295, %296 : vector<1x128xf32>
    %298 = vector.broadcast %2 : f32 to vector<1x128xf32>
    %299 = arith.mulf %298, %277 : vector<1x128xf32>
    %300 = arith.addf %297, %299 : vector<1x128xf32>
    %cst_51 = arith.constant 5.000000e-01 : f32
    %301 = vector.broadcast %cst_51 : f32 to vector<1x128xf32>
    %302 = arith.mulf %301, %292 : vector<1x128xf32>
    %303 = arith.addf %267, %302 : vector<1x128xf32>
    %cst_52 = arith.constant 5.000000e-01 : f32
    %304 = vector.broadcast %cst_52 : f32 to vector<1x128xf32>
    %305 = arith.mulf %304, %300 : vector<1x128xf32>
    %306 = arith.addf %277, %305 : vector<1x128xf32>
    %307 = vector.broadcast %303 : vector<1x128xf32> to vector<8x128xf32>
    %308 = arith.mulf %11, %307 : vector<8x128xf32>
    %309 = arith.addf %23, %308 : vector<8x128xf32>
    %310 = vector.broadcast %306 : vector<1x128xf32> to vector<8x128xf32>
    %311 = arith.mulf %14, %310 : vector<8x128xf32>
    %312 = arith.addf %309, %311 : vector<8x128xf32>
    %313 = math.tanh %312 : vector<8x128xf32>
    %314 = arith.mulf %17, %313 : vector<8x128xf32>
    %cst_53 = arith.constant dense<0.000000e+00> : vector<128xf32>
    %315 = vector.multi_reduction <add>, %314, %cst_53 [0] : vector<8x128xf32> to vector<128xf32>
    %316 = vector.shape_cast %315 : vector<128xf32> to vector<1x128xf32>
    %317 = vector.broadcast %0 : f32 to vector<1x128xf32>
    %318 = arith.addf %316, %317 : vector<1x128xf32>
    %319 = vector.broadcast %2 : f32 to vector<1x128xf32>
    %320 = arith.mulf %319, %303 : vector<1x128xf32>
    %321 = arith.addf %318, %320 : vector<1x128xf32>
    %322 = arith.mulf %20, %313 : vector<8x128xf32>
    %cst_54 = arith.constant dense<0.000000e+00> : vector<128xf32>
    %323 = vector.multi_reduction <add>, %322, %cst_54 [0] : vector<8x128xf32> to vector<128xf32>
    %324 = vector.shape_cast %323 : vector<128xf32> to vector<1x128xf32>
    %325 = vector.broadcast %1 : f32 to vector<1x128xf32>
    %326 = arith.addf %324, %325 : vector<1x128xf32>
    %327 = vector.broadcast %2 : f32 to vector<1x128xf32>
    %328 = arith.mulf %327, %306 : vector<1x128xf32>
    %329 = arith.addf %326, %328 : vector<1x128xf32>
    %cst_55 = arith.constant 5.000000e-01 : f32
    %330 = vector.broadcast %cst_55 : f32 to vector<1x128xf32>
    %331 = arith.mulf %330, %321 : vector<1x128xf32>
    %332 = arith.addf %267, %331 : vector<1x128xf32>
    %cst_56 = arith.constant 5.000000e-01 : f32
    %333 = vector.broadcast %cst_56 : f32 to vector<1x128xf32>
    %334 = arith.mulf %333, %329 : vector<1x128xf32>
    %335 = arith.addf %277, %334 : vector<1x128xf32>
    %336 = vector.broadcast %332 : vector<1x128xf32> to vector<8x128xf32>
    %337 = arith.mulf %11, %336 : vector<8x128xf32>
    %338 = arith.addf %23, %337 : vector<8x128xf32>
    %339 = vector.broadcast %335 : vector<1x128xf32> to vector<8x128xf32>
    %340 = arith.mulf %14, %339 : vector<8x128xf32>
    %341 = arith.addf %338, %340 : vector<8x128xf32>
    %342 = math.tanh %341 : vector<8x128xf32>
    %343 = arith.mulf %17, %342 : vector<8x128xf32>
    %cst_57 = arith.constant dense<0.000000e+00> : vector<128xf32>
    %344 = vector.multi_reduction <add>, %343, %cst_57 [0] : vector<8x128xf32> to vector<128xf32>
    %345 = vector.shape_cast %344 : vector<128xf32> to vector<1x128xf32>
    %346 = vector.broadcast %0 : f32 to vector<1x128xf32>
    %347 = arith.addf %345, %346 : vector<1x128xf32>
    %348 = vector.broadcast %2 : f32 to vector<1x128xf32>
    %349 = arith.mulf %348, %332 : vector<1x128xf32>
    %350 = arith.addf %347, %349 : vector<1x128xf32>
    %351 = arith.mulf %20, %342 : vector<8x128xf32>
    %cst_58 = arith.constant dense<0.000000e+00> : vector<128xf32>
    %352 = vector.multi_reduction <add>, %351, %cst_58 [0] : vector<8x128xf32> to vector<128xf32>
    %353 = vector.shape_cast %352 : vector<128xf32> to vector<1x128xf32>
    %354 = vector.broadcast %1 : f32 to vector<1x128xf32>
    %355 = arith.addf %353, %354 : vector<1x128xf32>
    %356 = vector.broadcast %2 : f32 to vector<1x128xf32>
    %357 = arith.mulf %356, %335 : vector<1x128xf32>
    %358 = arith.addf %355, %357 : vector<1x128xf32>
    %359 = arith.addf %267, %350 : vector<1x128xf32>
    %360 = arith.addf %277, %358 : vector<1x128xf32>
    %361 = vector.broadcast %359 : vector<1x128xf32> to vector<8x128xf32>
    %362 = arith.mulf %11, %361 : vector<8x128xf32>
    %363 = arith.addf %23, %362 : vector<8x128xf32>
    %364 = vector.broadcast %360 : vector<1x128xf32> to vector<8x128xf32>
    %365 = arith.mulf %14, %364 : vector<8x128xf32>
    %366 = arith.addf %363, %365 : vector<8x128xf32>
    %367 = math.tanh %366 : vector<8x128xf32>
    %368 = arith.mulf %17, %367 : vector<8x128xf32>
    %cst_59 = arith.constant dense<0.000000e+00> : vector<128xf32>
    %369 = vector.multi_reduction <add>, %368, %cst_59 [0] : vector<8x128xf32> to vector<128xf32>
    %370 = vector.shape_cast %369 : vector<128xf32> to vector<1x128xf32>
    %371 = vector.broadcast %0 : f32 to vector<1x128xf32>
    %372 = arith.addf %370, %371 : vector<1x128xf32>
    %373 = vector.broadcast %2 : f32 to vector<1x128xf32>
    %374 = arith.mulf %373, %359 : vector<1x128xf32>
    %375 = arith.addf %372, %374 : vector<1x128xf32>
    %376 = arith.mulf %20, %367 : vector<8x128xf32>
    %cst_60 = arith.constant dense<0.000000e+00> : vector<128xf32>
    %377 = vector.multi_reduction <add>, %376, %cst_60 [0] : vector<8x128xf32> to vector<128xf32>
    %378 = vector.shape_cast %377 : vector<128xf32> to vector<1x128xf32>
    %379 = vector.broadcast %1 : f32 to vector<1x128xf32>
    %380 = arith.addf %378, %379 : vector<1x128xf32>
    %381 = vector.broadcast %2 : f32 to vector<1x128xf32>
    %382 = arith.mulf %381, %360 : vector<1x128xf32>
    %383 = arith.addf %380, %382 : vector<1x128xf32>
    %cst_61 = arith.constant 2.000000e+00 : f32
    %384 = vector.broadcast %cst_61 : f32 to vector<1x128xf32>
    %385 = arith.mulf %384, %321 : vector<1x128xf32>
    %386 = arith.addf %292, %385 : vector<1x128xf32>
    %cst_62 = arith.constant 2.000000e+00 : f32
    %387 = vector.broadcast %cst_62 : f32 to vector<1x128xf32>
    %388 = arith.mulf %387, %350 : vector<1x128xf32>
    %389 = arith.addf %386, %388 : vector<1x128xf32>
    %390 = arith.addf %389, %375 : vector<1x128xf32>
    %cst_63 = arith.constant 0.166666672 : f32
    %391 = vector.broadcast %cst_63 : f32 to vector<1x128xf32>
    %392 = arith.mulf %390, %391 : vector<1x128xf32>
    %393 = arith.addf %267, %392 : vector<1x128xf32>
    %cst_64 = arith.constant 2.000000e+00 : f32
    %394 = vector.broadcast %cst_64 : f32 to vector<1x128xf32>
    %395 = arith.mulf %394, %329 : vector<1x128xf32>
    %396 = arith.addf %300, %395 : vector<1x128xf32>
    %cst_65 = arith.constant 2.000000e+00 : f32
    %397 = vector.broadcast %cst_65 : f32 to vector<1x128xf32>
    %398 = arith.mulf %397, %358 : vector<1x128xf32>
    %399 = arith.addf %396, %398 : vector<1x128xf32>
    %400 = arith.addf %399, %383 : vector<1x128xf32>
    %cst_66 = arith.constant 0.166666672 : f32
    %401 = vector.broadcast %cst_66 : f32 to vector<1x128xf32>
    %402 = arith.mulf %400, %401 : vector<1x128xf32>
    %403 = arith.addf %277, %402 : vector<1x128xf32>
    %404 = vector.broadcast %393 : vector<1x128xf32> to vector<8x128xf32>
    %405 = arith.mulf %11, %404 : vector<8x128xf32>
    %406 = arith.addf %23, %405 : vector<8x128xf32>
    %407 = vector.broadcast %403 : vector<1x128xf32> to vector<8x128xf32>
    %408 = arith.mulf %14, %407 : vector<8x128xf32>
    %409 = arith.addf %406, %408 : vector<8x128xf32>
    %410 = math.tanh %409 : vector<8x128xf32>
    %411 = arith.mulf %17, %410 : vector<8x128xf32>
    %cst_67 = arith.constant dense<0.000000e+00> : vector<128xf32>
    %412 = vector.multi_reduction <add>, %411, %cst_67 [0] : vector<8x128xf32> to vector<128xf32>
    %413 = vector.shape_cast %412 : vector<128xf32> to vector<1x128xf32>
    %414 = vector.broadcast %0 : f32 to vector<1x128xf32>
    %415 = arith.addf %413, %414 : vector<1x128xf32>
    %416 = vector.broadcast %2 : f32 to vector<1x128xf32>
    %417 = arith.mulf %416, %393 : vector<1x128xf32>
    %418 = arith.addf %415, %417 : vector<1x128xf32>
    %419 = arith.mulf %20, %410 : vector<8x128xf32>
    %cst_68 = arith.constant dense<0.000000e+00> : vector<128xf32>
    %420 = vector.multi_reduction <add>, %419, %cst_68 [0] : vector<8x128xf32> to vector<128xf32>
    %421 = vector.shape_cast %420 : vector<128xf32> to vector<1x128xf32>
    %422 = vector.broadcast %1 : f32 to vector<1x128xf32>
    %423 = arith.addf %421, %422 : vector<1x128xf32>
    %424 = vector.broadcast %2 : f32 to vector<1x128xf32>
    %425 = arith.mulf %424, %403 : vector<1x128xf32>
    %426 = arith.addf %423, %425 : vector<1x128xf32>
    %cst_69 = arith.constant 5.000000e-01 : f32
    %427 = vector.broadcast %cst_69 : f32 to vector<1x128xf32>
    %428 = arith.mulf %427, %418 : vector<1x128xf32>
    %429 = arith.addf %393, %428 : vector<1x128xf32>
    %cst_70 = arith.constant 5.000000e-01 : f32
    %430 = vector.broadcast %cst_70 : f32 to vector<1x128xf32>
    %431 = arith.mulf %430, %426 : vector<1x128xf32>
    %432 = arith.addf %403, %431 : vector<1x128xf32>
    %433 = vector.broadcast %429 : vector<1x128xf32> to vector<8x128xf32>
    %434 = arith.mulf %11, %433 : vector<8x128xf32>
    %435 = arith.addf %23, %434 : vector<8x128xf32>
    %436 = vector.broadcast %432 : vector<1x128xf32> to vector<8x128xf32>
    %437 = arith.mulf %14, %436 : vector<8x128xf32>
    %438 = arith.addf %435, %437 : vector<8x128xf32>
    %439 = math.tanh %438 : vector<8x128xf32>
    %440 = arith.mulf %17, %439 : vector<8x128xf32>
    %cst_71 = arith.constant dense<0.000000e+00> : vector<128xf32>
    %441 = vector.multi_reduction <add>, %440, %cst_71 [0] : vector<8x128xf32> to vector<128xf32>
    %442 = vector.shape_cast %441 : vector<128xf32> to vector<1x128xf32>
    %443 = vector.broadcast %0 : f32 to vector<1x128xf32>
    %444 = arith.addf %442, %443 : vector<1x128xf32>
    %445 = vector.broadcast %2 : f32 to vector<1x128xf32>
    %446 = arith.mulf %445, %429 : vector<1x128xf32>
    %447 = arith.addf %444, %446 : vector<1x128xf32>
    %448 = arith.mulf %20, %439 : vector<8x128xf32>
    %cst_72 = arith.constant dense<0.000000e+00> : vector<128xf32>
    %449 = vector.multi_reduction <add>, %448, %cst_72 [0] : vector<8x128xf32> to vector<128xf32>
    %450 = vector.shape_cast %449 : vector<128xf32> to vector<1x128xf32>
    %451 = vector.broadcast %1 : f32 to vector<1x128xf32>
    %452 = arith.addf %450, %451 : vector<1x128xf32>
    %453 = vector.broadcast %2 : f32 to vector<1x128xf32>
    %454 = arith.mulf %453, %432 : vector<1x128xf32>
    %455 = arith.addf %452, %454 : vector<1x128xf32>
    %cst_73 = arith.constant 5.000000e-01 : f32
    %456 = vector.broadcast %cst_73 : f32 to vector<1x128xf32>
    %457 = arith.mulf %456, %447 : vector<1x128xf32>
    %458 = arith.addf %393, %457 : vector<1x128xf32>
    %cst_74 = arith.constant 5.000000e-01 : f32
    %459 = vector.broadcast %cst_74 : f32 to vector<1x128xf32>
    %460 = arith.mulf %459, %455 : vector<1x128xf32>
    %461 = arith.addf %403, %460 : vector<1x128xf32>
    %462 = vector.broadcast %458 : vector<1x128xf32> to vector<8x128xf32>
    %463 = arith.mulf %11, %462 : vector<8x128xf32>
    %464 = arith.addf %23, %463 : vector<8x128xf32>
    %465 = vector.broadcast %461 : vector<1x128xf32> to vector<8x128xf32>
    %466 = arith.mulf %14, %465 : vector<8x128xf32>
    %467 = arith.addf %464, %466 : vector<8x128xf32>
    %468 = math.tanh %467 : vector<8x128xf32>
    %469 = arith.mulf %17, %468 : vector<8x128xf32>
    %cst_75 = arith.constant dense<0.000000e+00> : vector<128xf32>
    %470 = vector.multi_reduction <add>, %469, %cst_75 [0] : vector<8x128xf32> to vector<128xf32>
    %471 = vector.shape_cast %470 : vector<128xf32> to vector<1x128xf32>
    %472 = vector.broadcast %0 : f32 to vector<1x128xf32>
    %473 = arith.addf %471, %472 : vector<1x128xf32>
    %474 = vector.broadcast %2 : f32 to vector<1x128xf32>
    %475 = arith.mulf %474, %458 : vector<1x128xf32>
    %476 = arith.addf %473, %475 : vector<1x128xf32>
    %477 = arith.mulf %20, %468 : vector<8x128xf32>
    %cst_76 = arith.constant dense<0.000000e+00> : vector<128xf32>
    %478 = vector.multi_reduction <add>, %477, %cst_76 [0] : vector<8x128xf32> to vector<128xf32>
    %479 = vector.shape_cast %478 : vector<128xf32> to vector<1x128xf32>
    %480 = vector.broadcast %1 : f32 to vector<1x128xf32>
    %481 = arith.addf %479, %480 : vector<1x128xf32>
    %482 = vector.broadcast %2 : f32 to vector<1x128xf32>
    %483 = arith.mulf %482, %461 : vector<1x128xf32>
    %484 = arith.addf %481, %483 : vector<1x128xf32>
    %485 = arith.addf %393, %476 : vector<1x128xf32>
    %486 = arith.addf %403, %484 : vector<1x128xf32>
    %487 = vector.broadcast %485 : vector<1x128xf32> to vector<8x128xf32>
    %488 = arith.mulf %11, %487 : vector<8x128xf32>
    %489 = arith.addf %23, %488 : vector<8x128xf32>
    %490 = vector.broadcast %486 : vector<1x128xf32> to vector<8x128xf32>
    %491 = arith.mulf %14, %490 : vector<8x128xf32>
    %492 = arith.addf %489, %491 : vector<8x128xf32>
    %493 = math.tanh %492 : vector<8x128xf32>
    %494 = arith.mulf %17, %493 : vector<8x128xf32>
    %cst_77 = arith.constant dense<0.000000e+00> : vector<128xf32>
    %495 = vector.multi_reduction <add>, %494, %cst_77 [0] : vector<8x128xf32> to vector<128xf32>
    %496 = vector.shape_cast %495 : vector<128xf32> to vector<1x128xf32>
    %497 = vector.broadcast %0 : f32 to vector<1x128xf32>
    %498 = arith.addf %496, %497 : vector<1x128xf32>
    %499 = vector.broadcast %2 : f32 to vector<1x128xf32>
    %500 = arith.mulf %499, %485 : vector<1x128xf32>
    %501 = arith.addf %498, %500 : vector<1x128xf32>
    %502 = arith.mulf %20, %493 : vector<8x128xf32>
    %cst_78 = arith.constant dense<0.000000e+00> : vector<128xf32>
    %503 = vector.multi_reduction <add>, %502, %cst_78 [0] : vector<8x128xf32> to vector<128xf32>
    %504 = vector.shape_cast %503 : vector<128xf32> to vector<1x128xf32>
    %505 = vector.broadcast %1 : f32 to vector<1x128xf32>
    %506 = arith.addf %504, %505 : vector<1x128xf32>
    %507 = vector.broadcast %2 : f32 to vector<1x128xf32>
    %508 = arith.mulf %507, %486 : vector<1x128xf32>
    %509 = arith.addf %506, %508 : vector<1x128xf32>
    %cst_79 = arith.constant 2.000000e+00 : f32
    %510 = vector.broadcast %cst_79 : f32 to vector<1x128xf32>
    %511 = arith.mulf %510, %447 : vector<1x128xf32>
    %512 = arith.addf %418, %511 : vector<1x128xf32>
    %cst_80 = arith.constant 2.000000e+00 : f32
    %513 = vector.broadcast %cst_80 : f32 to vector<1x128xf32>
    %514 = arith.mulf %513, %476 : vector<1x128xf32>
    %515 = arith.addf %512, %514 : vector<1x128xf32>
    %516 = arith.addf %515, %501 : vector<1x128xf32>
    %cst_81 = arith.constant 0.166666672 : f32
    %517 = vector.broadcast %cst_81 : f32 to vector<1x128xf32>
    %518 = arith.mulf %516, %517 : vector<1x128xf32>
    %519 = arith.addf %393, %518 : vector<1x128xf32>
    %cst_82 = arith.constant 2.000000e+00 : f32
    %520 = vector.broadcast %cst_82 : f32 to vector<1x128xf32>
    %521 = arith.mulf %520, %455 : vector<1x128xf32>
    %522 = arith.addf %426, %521 : vector<1x128xf32>
    %cst_83 = arith.constant 2.000000e+00 : f32
    %523 = vector.broadcast %cst_83 : f32 to vector<1x128xf32>
    %524 = arith.mulf %523, %484 : vector<1x128xf32>
    %525 = arith.addf %522, %524 : vector<1x128xf32>
    %526 = arith.addf %525, %509 : vector<1x128xf32>
    %cst_84 = arith.constant 0.166666672 : f32
    %527 = vector.broadcast %cst_84 : f32 to vector<1x128xf32>
    %528 = arith.mulf %526, %527 : vector<1x128xf32>
    %529 = arith.addf %403, %528 : vector<1x128xf32>
    %530 = vector.broadcast %519 : vector<1x128xf32> to vector<8x128xf32>
    %531 = arith.mulf %11, %530 : vector<8x128xf32>
    %532 = arith.addf %23, %531 : vector<8x128xf32>
    %533 = vector.broadcast %529 : vector<1x128xf32> to vector<8x128xf32>
    %534 = arith.mulf %14, %533 : vector<8x128xf32>
    %535 = arith.addf %532, %534 : vector<8x128xf32>
    %536 = math.tanh %535 : vector<8x128xf32>
    %537 = arith.mulf %17, %536 : vector<8x128xf32>
    %cst_85 = arith.constant dense<0.000000e+00> : vector<128xf32>
    %538 = vector.multi_reduction <add>, %537, %cst_85 [0] : vector<8x128xf32> to vector<128xf32>
    %539 = vector.shape_cast %538 : vector<128xf32> to vector<1x128xf32>
    %540 = vector.broadcast %0 : f32 to vector<1x128xf32>
    %541 = arith.addf %539, %540 : vector<1x128xf32>
    %542 = vector.broadcast %2 : f32 to vector<1x128xf32>
    %543 = arith.mulf %542, %519 : vector<1x128xf32>
    %544 = arith.addf %541, %543 : vector<1x128xf32>
    %545 = arith.mulf %20, %536 : vector<8x128xf32>
    %cst_86 = arith.constant dense<0.000000e+00> : vector<128xf32>
    %546 = vector.multi_reduction <add>, %545, %cst_86 [0] : vector<8x128xf32> to vector<128xf32>
    %547 = vector.shape_cast %546 : vector<128xf32> to vector<1x128xf32>
    %548 = vector.broadcast %1 : f32 to vector<1x128xf32>
    %549 = arith.addf %547, %548 : vector<1x128xf32>
    %550 = vector.broadcast %2 : f32 to vector<1x128xf32>
    %551 = arith.mulf %550, %529 : vector<1x128xf32>
    %552 = arith.addf %549, %551 : vector<1x128xf32>
    %cst_87 = arith.constant 5.000000e-01 : f32
    %553 = vector.broadcast %cst_87 : f32 to vector<1x128xf32>
    %554 = arith.mulf %553, %544 : vector<1x128xf32>
    %555 = arith.addf %519, %554 : vector<1x128xf32>
    %cst_88 = arith.constant 5.000000e-01 : f32
    %556 = vector.broadcast %cst_88 : f32 to vector<1x128xf32>
    %557 = arith.mulf %556, %552 : vector<1x128xf32>
    %558 = arith.addf %529, %557 : vector<1x128xf32>
    %559 = vector.broadcast %555 : vector<1x128xf32> to vector<8x128xf32>
    %560 = arith.mulf %11, %559 : vector<8x128xf32>
    %561 = arith.addf %23, %560 : vector<8x128xf32>
    %562 = vector.broadcast %558 : vector<1x128xf32> to vector<8x128xf32>
    %563 = arith.mulf %14, %562 : vector<8x128xf32>
    %564 = arith.addf %561, %563 : vector<8x128xf32>
    %565 = math.tanh %564 : vector<8x128xf32>
    %566 = arith.mulf %17, %565 : vector<8x128xf32>
    %cst_89 = arith.constant dense<0.000000e+00> : vector<128xf32>
    %567 = vector.multi_reduction <add>, %566, %cst_89 [0] : vector<8x128xf32> to vector<128xf32>
    %568 = vector.shape_cast %567 : vector<128xf32> to vector<1x128xf32>
    %569 = vector.broadcast %0 : f32 to vector<1x128xf32>
    %570 = arith.addf %568, %569 : vector<1x128xf32>
    %571 = vector.broadcast %2 : f32 to vector<1x128xf32>
    %572 = arith.mulf %571, %555 : vector<1x128xf32>
    %573 = arith.addf %570, %572 : vector<1x128xf32>
    %574 = arith.mulf %20, %565 : vector<8x128xf32>
    %cst_90 = arith.constant dense<0.000000e+00> : vector<128xf32>
    %575 = vector.multi_reduction <add>, %574, %cst_90 [0] : vector<8x128xf32> to vector<128xf32>
    %576 = vector.shape_cast %575 : vector<128xf32> to vector<1x128xf32>
    %577 = vector.broadcast %1 : f32 to vector<1x128xf32>
    %578 = arith.addf %576, %577 : vector<1x128xf32>
    %579 = vector.broadcast %2 : f32 to vector<1x128xf32>
    %580 = arith.mulf %579, %558 : vector<1x128xf32>
    %581 = arith.addf %578, %580 : vector<1x128xf32>
    %cst_91 = arith.constant 5.000000e-01 : f32
    %582 = vector.broadcast %cst_91 : f32 to vector<1x128xf32>
    %583 = arith.mulf %582, %573 : vector<1x128xf32>
    %584 = arith.addf %519, %583 : vector<1x128xf32>
    %cst_92 = arith.constant 5.000000e-01 : f32
    %585 = vector.broadcast %cst_92 : f32 to vector<1x128xf32>
    %586 = arith.mulf %585, %581 : vector<1x128xf32>
    %587 = arith.addf %529, %586 : vector<1x128xf32>
    %588 = vector.broadcast %584 : vector<1x128xf32> to vector<8x128xf32>
    %589 = arith.mulf %11, %588 : vector<8x128xf32>
    %590 = arith.addf %23, %589 : vector<8x128xf32>
    %591 = vector.broadcast %587 : vector<1x128xf32> to vector<8x128xf32>
    %592 = arith.mulf %14, %591 : vector<8x128xf32>
    %593 = arith.addf %590, %592 : vector<8x128xf32>
    %594 = math.tanh %593 : vector<8x128xf32>
    %595 = arith.mulf %17, %594 : vector<8x128xf32>
    %cst_93 = arith.constant dense<0.000000e+00> : vector<128xf32>
    %596 = vector.multi_reduction <add>, %595, %cst_93 [0] : vector<8x128xf32> to vector<128xf32>
    %597 = vector.shape_cast %596 : vector<128xf32> to vector<1x128xf32>
    %598 = vector.broadcast %0 : f32 to vector<1x128xf32>
    %599 = arith.addf %597, %598 : vector<1x128xf32>
    %600 = vector.broadcast %2 : f32 to vector<1x128xf32>
    %601 = arith.mulf %600, %584 : vector<1x128xf32>
    %602 = arith.addf %599, %601 : vector<1x128xf32>
    %603 = arith.mulf %20, %594 : vector<8x128xf32>
    %cst_94 = arith.constant dense<0.000000e+00> : vector<128xf32>
    %604 = vector.multi_reduction <add>, %603, %cst_94 [0] : vector<8x128xf32> to vector<128xf32>
    %605 = vector.shape_cast %604 : vector<128xf32> to vector<1x128xf32>
    %606 = vector.broadcast %1 : f32 to vector<1x128xf32>
    %607 = arith.addf %605, %606 : vector<1x128xf32>
    %608 = vector.broadcast %2 : f32 to vector<1x128xf32>
    %609 = arith.mulf %608, %587 : vector<1x128xf32>
    %610 = arith.addf %607, %609 : vector<1x128xf32>
    %611 = arith.addf %519, %602 : vector<1x128xf32>
    %612 = arith.addf %529, %610 : vector<1x128xf32>
    %613 = vector.broadcast %611 : vector<1x128xf32> to vector<8x128xf32>
    %614 = arith.mulf %11, %613 : vector<8x128xf32>
    %615 = arith.addf %23, %614 : vector<8x128xf32>
    %616 = vector.broadcast %612 : vector<1x128xf32> to vector<8x128xf32>
    %617 = arith.mulf %14, %616 : vector<8x128xf32>
    %618 = arith.addf %615, %617 : vector<8x128xf32>
    %619 = math.tanh %618 : vector<8x128xf32>
    %620 = arith.mulf %17, %619 : vector<8x128xf32>
    %cst_95 = arith.constant dense<0.000000e+00> : vector<128xf32>
    %621 = vector.multi_reduction <add>, %620, %cst_95 [0] : vector<8x128xf32> to vector<128xf32>
    %622 = vector.shape_cast %621 : vector<128xf32> to vector<1x128xf32>
    %623 = vector.broadcast %0 : f32 to vector<1x128xf32>
    %624 = arith.addf %622, %623 : vector<1x128xf32>
    %625 = vector.broadcast %2 : f32 to vector<1x128xf32>
    %626 = arith.mulf %625, %611 : vector<1x128xf32>
    %627 = arith.addf %624, %626 : vector<1x128xf32>
    %628 = arith.mulf %20, %619 : vector<8x128xf32>
    %cst_96 = arith.constant dense<0.000000e+00> : vector<128xf32>
    %629 = vector.multi_reduction <add>, %628, %cst_96 [0] : vector<8x128xf32> to vector<128xf32>
    %630 = vector.shape_cast %629 : vector<128xf32> to vector<1x128xf32>
    %631 = vector.broadcast %1 : f32 to vector<1x128xf32>
    %632 = arith.addf %630, %631 : vector<1x128xf32>
    %633 = vector.broadcast %2 : f32 to vector<1x128xf32>
    %634 = arith.mulf %633, %612 : vector<1x128xf32>
    %635 = arith.addf %632, %634 : vector<1x128xf32>
    %cst_97 = arith.constant 2.000000e+00 : f32
    %636 = vector.broadcast %cst_97 : f32 to vector<1x128xf32>
    %637 = arith.mulf %636, %573 : vector<1x128xf32>
    %638 = arith.addf %544, %637 : vector<1x128xf32>
    %cst_98 = arith.constant 2.000000e+00 : f32
    %639 = vector.broadcast %cst_98 : f32 to vector<1x128xf32>
    %640 = arith.mulf %639, %602 : vector<1x128xf32>
    %641 = arith.addf %638, %640 : vector<1x128xf32>
    %642 = arith.addf %641, %627 : vector<1x128xf32>
    %cst_99 = arith.constant 0.166666672 : f32
    %643 = vector.broadcast %cst_99 : f32 to vector<1x128xf32>
    %644 = arith.mulf %642, %643 : vector<1x128xf32>
    %645 = arith.addf %519, %644 : vector<1x128xf32>
    %cst_100 = arith.constant 2.000000e+00 : f32
    %646 = vector.broadcast %cst_100 : f32 to vector<1x128xf32>
    %647 = arith.mulf %646, %581 : vector<1x128xf32>
    %648 = arith.addf %552, %647 : vector<1x128xf32>
    %cst_101 = arith.constant 2.000000e+00 : f32
    %649 = vector.broadcast %cst_101 : f32 to vector<1x128xf32>
    %650 = arith.mulf %649, %610 : vector<1x128xf32>
    %651 = arith.addf %648, %650 : vector<1x128xf32>
    %652 = arith.addf %651, %635 : vector<1x128xf32>
    %cst_102 = arith.constant 0.166666672 : f32
    %653 = vector.broadcast %cst_102 : f32 to vector<1x128xf32>
    %654 = arith.mulf %652, %653 : vector<1x128xf32>
    %655 = arith.addf %529, %654 : vector<1x128xf32>
    %656 = vector.broadcast %3 : f32 to vector<1x128xf32>
    %657 = arith.mulf %656, %645 : vector<1x128xf32>
    %658 = vector.broadcast %4 : f32 to vector<1x128xf32>
    %659 = arith.mulf %658, %655 : vector<1x128xf32>
    %660 = arith.addf %657, %659 : vector<1x128xf32>
    %661 = vector.broadcast %7 : f32 to vector<1x128xf32>
    %662 = arith.addf %660, %661 : vector<1x128xf32>
    %c0_103 = arith.constant 0 : index
    %c0_104 = arith.constant 0 : index
    %663 = vector.load %arg6[%c0_103, %c0_104] : memref<2x128xf32, #tpu.memory_space<vmem>>, vector<1x128xf32>
    tpu.vector_store %arg6[%c0_103, %c0_104], %662 {strides = array<i32>} : memref<2x128xf32, #tpu.memory_space<vmem>>, vector<1x128xf32>,
    %664 = vector.broadcast %5 : f32 to vector<1x128xf32>
    %665 = arith.mulf %664, %645 : vector<1x128xf32>
    %666 = vector.broadcast %6 : f32 to vector<1x128xf32>
    %667 = arith.mulf %666, %655 : vector<1x128xf32>
    %668 = arith.addf %665, %667 : vector<1x128xf32>
    %669 = vector.broadcast %8 : f32 to vector<1x128xf32>
    %670 = arith.addf %668, %669 : vector<1x128xf32>
    %c1_105 = arith.constant 1 : index
    %c0_106 = arith.constant 0 : index
    %671 = vector.load %arg6[%c1_105, %c0_106] : memref<2x128xf32, #tpu.memory_space<vmem>>, vector<1x128xf32>
    tpu.vector_store %arg6[%c1_105, %c0_106], %670 {strides = array<i32>} : memref<2x128xf32, #tpu.memory_space<vmem>>, vector<1x128xf32>,
    %672 = arith.maximumf %662, %670 : vector<1x128xf32>
    %673 = arith.subf %662, %672 : vector<1x128xf32>
    %674 = math.exp %673 : vector<1x128xf32>
    %675 = arith.subf %670, %672 : vector<1x128xf32>
    %676 = math.exp %675 : vector<1x128xf32>
    %677 = arith.addf %674, %676 : vector<1x128xf32>
    %678 = tpu.reciprocal %677 : vector<1x128xf32> -> vector<1x128xf32>
    %679 = arith.mulf %674, %678 : vector<1x128xf32>
    %c0_107 = arith.constant 0 : index
    %c0_108 = arith.constant 0 : index
    %680 = vector.load %arg7[%c0_107, %c0_108] : memref<2x128xf32, #tpu.memory_space<vmem>>, vector<1x128xf32>
    tpu.vector_store %arg7[%c0_107, %c0_108], %679 {strides = array<i32>} : memref<2x128xf32, #tpu.memory_space<vmem>>, vector<1x128xf32>,
    %681 = arith.mulf %676, %678 : vector<1x128xf32>
    %c1_109 = arith.constant 1 : index
    %c0_110 = arith.constant 0 : index
    %682 = vector.load %arg7[%c1_109, %c0_110] : memref<2x128xf32, #tpu.memory_space<vmem>>, vector<1x128xf32>
    tpu.vector_store %arg7[%c1_109, %c0_110], %681 {strides = array<i32>} : memref<2x128xf32, #tpu.memory_space<vmem>>, vector<1x128xf32>,
    return
  }
  func.func @transform_0(%arg0: i32, %arg1: memref<9xf32, #tpu.memory_space<smem>>) -> (i32, i32) {
    %c0_i32 = arith.constant 0 : i32
    %c0_i32_0 = arith.constant 0 : i32
    return %c0_i32, %arg0 : i32, i32
  }
  func.func @transform_1(%arg0: i32, %arg1: memref<9xf32, #tpu.memory_space<smem>>) -> (i32, i32) {
    %c0_i32 = arith.constant 0 : i32
    %c0_i32_0 = arith.constant 0 : i32
    %c0_i32_1 = arith.constant 0 : i32
    return %c0_i32, %c0_i32_0 : i32, i32
  }
  func.func @transform_2(%arg0: i32, %arg1: memref<9xf32, #tpu.memory_space<smem>>) -> (i32, i32) {
    %c0_i32 = arith.constant 0 : i32
    %c0_i32_0 = arith.constant 0 : i32
    %c0_i32_1 = arith.constant 0 : i32
    return %c0_i32, %c0_i32_0 : i32, i32
  }
  func.func @transform_3(%arg0: i32, %arg1: memref<9xf32, #tpu.memory_space<smem>>) -> (i32, i32) {
    %c0_i32 = arith.constant 0 : i32
    %c0_i32_0 = arith.constant 0 : i32
    %c0_i32_1 = arith.constant 0 : i32
    return %c0_i32, %c0_i32_0 : i32, i32
  }
  func.func @transform_4(%arg0: i32, %arg1: memref<9xf32, #tpu.memory_space<smem>>) -> (i32, i32) {
    %c0_i32 = arith.constant 0 : i32
    %c0_i32_0 = arith.constant 0 : i32
    return %c0_i32, %arg0 : i32, i32
  }
  func.func @transform_5(%arg0: i32, %arg1: memref<9xf32, #tpu.memory_space<smem>>) -> (i32, i32) {
    %c0_i32 = arith.constant 0 : i32
    %c0_i32_0 = arith.constant 0 : i32
    return %c0_i32, %arg0 : i32, i32
  }
}

</mosaic_0001>

<bundles_post_ra>
// kernel: tpu_custom_call.1
= control target key start
LH: loop header
LB: loop body
LE: loop exit
PB: predicated region body
PF: predicated region fallthrough
CT: control target
= control target key end

     0   :  { %s1415_s0 = inlined_call_operand.vmem [shape: f32[9], index: 0, kind: input, shape index: {}]   ;;  %s1416_s1 = inlined_call_operand.vmem [shape: f32[2,128], index: 1, kind: input, shape index: {}]   ;;  %s1417_s2 = inlined_call_operand.vmem [shape: f32[8,2], index: 2, kind: input, shape index: {}]   ;;  %s1418_s3 = inlined_call_operand.vmem [shape: f32[8,1], index: 3, kind: input, shape index: {}]   ;;  %s1419_s4 = inlined_call_operand.vmem [shape: f32[8,2], index: 4, kind: input, shape index: {}]   ;;  %s1420_s5 = inlined_call_operand.hbm [shape: f32[2,128], index: 5, kind: output, shape index: {0}]   ;;  %s1421_s6 = inlined_call_operand.hbm [shape: f32[2,128], index: 6, kind: output, shape index: {1}]  }
   0x1   :  { %s12_s23 = sshll.u32 %s1415_s0, 4  ;;  %s13_s23 = int_to_ptr.vmem [resolvable:$true] %s12_s23 }
   0x2   :  { %s969_s24 = scalar_lea.vmem %s13_s23, 16  ;;  %p974_p1 = scmp.lt.s32.totalorder %s13_s23, %s13_s23 }
   0x3   :  { %p970_p0 = scmp.ne.s32.totalorder %s13_s23, %s969_s24  ;;  %p975_p2 = scmp.lt.s32.totalorder %s969_s24, %s969_s24 }
   0x5   :  { %p976_p3 = por %p975_p2, %p974_p1 }
   0x7   :  { %p977_p4 = pnand %p976_p3, %p970_p0 }
   0x9   :  { %980 = shalt.err (!%p977_p4)  }
   0xa   :  { %s1027_s25 = smov [#allocation3]  }
   0xb   :  { %15 = dma.vmem_to_smem %s13_s23, 16, %s1027_s25, [#allocation2] }
   0xc   :  { %1021 = dma.done.wait [#allocation2], 16 }
   0xd   :  { %1022 = vsyncadd [#allocation2], 4294967280 }
   0xe   :  { %17 = sfence }
   0xf   :  { %18 = vsyncpa [#allocation5], 0  ;;  %v37_v0 = vld [vmem:[%s1417_s2] sm:$0xff]  ;;  %v1028_v2 = vmov 0  }
  0x10   :  { %v57_v1 = vld [vmem:[%s1418_s3] sm:$0xff]  ;;  %918 = vset.pattern.permute.xlu0 %v1028_v2  ;;  %920 = vset.pattern.permute.xlu1 %v1028_v2 }
  0x11   :  { %19 = vsyncpa [#allocation7], 0  ;;  %40 = vperm.xlu0 %918, %v37_v0   ;;  %60 = vperm.xlu1 %920, %v57_v1   ;;  %v47_v3 = vld [vmem:[%s1419_s4] sm:$0xff]  ;;  %v1029_v4 = vmov 1   ;;  %v65_v5 = vlaneseq  ;;  %s28_s8 = sld [smem:[#allocation3]]  ;;  %s1030_s16 = smov [#allocation4]  }
  0x12   :  { %v1084_v8 = vld [vmem:[%s1416_s1] sm:$0x1]  ;;  %v1091_v10 = vld [vmem:[%s1416_s1 + $0x1] sm:$0x1]  ;;  %s906_s1 = sld [smem:[#allocation3 + $0x2]]  ;;  %s883_s17 = sshll.u32 %s1030_s16, 4  ;;  %s884_s17 = int_to_ptr.vmem [resolvable:$true] %s883_s17 }
  0x13   :  { %v66_v6 = vshrl.u32 %v65_v5, 7  ;;  %s905_s9 = sld [smem:[#allocation3 + $0x1]]  ;;  %s981_s18 = scalar_lea.vmem %s884_s17, 32 }
  0x14   :  { %s907_s10 = sld [smem:[#allocation3 + $0x3]]  ;;  %p982_p5 = scmp.ne.s32.totalorder %s884_s17, %s981_s18 }
  0x15   :  { %919 = vset.pattern.permute.xlu0 %v1029_v4  ;;  %50 = vperm.xlu1 %920, %v47_v3   ;;  %v1079_v7 = vsub.s32 0, %v66_v6  ;;  %s908_s11 = sld [smem:[#allocation3 + $0x4]]  ;;  %p986_p6 = scmp.lt.s32.totalorder %s884_s17, %s884_s17 }
  0x16   :  { %44 = vperm.xlu0 %919, %v37_v0   ;;  %s909_s12 = sld [smem:[#allocation3 + $0x5]]  ;;  %p987_p7 = scmp.lt.s32.totalorder %s981_s18, %s981_s18 }
  0x17   :  { %v68_v9 = vrot.slane %v1084_v8, %v1079_v7  ;;  %v74_v13 = vrot.slane %v1091_v10, %v1079_v7  ;;  %v1112_v35 = vstv %s28_s8  ;;  %s910_s13 = sld [smem:[#allocation3 + $0x6]] }
  0x18   :  { %v1110_v32 = vstv %s906_s1  ;;  %s911_s14 = sld [smem:[#allocation3 + $0x7]]  ;;  %p988_p8 = por %p987_p7, %p986_p6 }
  0x19   :  { %921 = vset.pattern.permute.xlu1 %v1029_v4  ;;  %v1114_v36 = vstv %s905_s9  ;;  %v88_v38 = vmul.f32 %v1110_v32, %v1084_v8  ;;  %v99_v40 = vmul.f32 %v1110_v32, %v1091_v10  ;;  %s912_s15 = sld [smem:[#allocation3 + $0x8]] }
  0x1a   :  { %54 = vperm.xlu1 %921, %v47_v3   ;;  %922 = vset.pattern.permute.xlu0 %v1028_v2  ;;  %p989_p9 = pnand %p988_p8, %p982_p5 }
  0x8c   :  { %v1093_v11 = vpop.permute.xlu0 %40  ;;  %v1098_v14 = vpop.permute.xlu1 %60 }
  0x8d   :  { %v69_v12 = vmul.f32 %v68_v9, %v1093_v11 }
  0x8f   :  { %v70_v16 = vadd.f32 %v69_v12, %v1098_v14 }
  0x90   :  { %v1104_v19 = vpop.permute.xlu1 %50 }
  0x91   :  { %v1100_v15 = vpop.permute.xlu0 %44 }
  0x92   :  { %v75_v17 = vmul.f32 %v74_v13, %v1100_v15 }
  0x94   :  { %v76_v18 = vadd.f32 %v75_v17, %v70_v16 }
  0x95   :  { %v1106_v20 = vpop.permute.xlu1 %54 }
  0x96   :  { %923 = vtanh.f32 %v76_v18 }
  0xa3   :  { %v924_v21 = vpop.eup %923 }
  0xa4   :  { %v78_v22 = vmul.f32 %v924_v21, %v1104_v19  ;;  %v90_v23 = vmul.f32 %v924_v21, %v1106_v20 }
  0xa6   :  { %v79_v24 = vrot.slane %v78_v22, 4  ;;  %v91_v25 = vrot.slane %v90_v23, 4 }
  0xa8   :  { %v80_v26 = vadd.f32 %v79_v24, %v78_v22  ;;  %v92_v27 = vadd.f32 %v91_v25, %v90_v23 }
  0xaa   :  { %v81_v28 = vrot.slane %v80_v26, 2  ;;  %v93_v29 = vrot.slane %v92_v27, 2 }
  0xac   :  { %v82_v30 = vadd.f32 %v81_v28, %v80_v26  ;;  %v94_v31 = vadd.f32 %v93_v29, %v92_v27 }
  0xae   :  { %v83_v33 = vrot.slane %v82_v30, 1  ;;  %v95_v34 = vrot.slane %v94_v31, 1 }
  0xb0   :  { %v84_v37 = vadd.f32 %v83_v33, %v82_v30  ;;  %v96_v39 = vadd.f32 %v95_v34, %v94_v31 }
  0xb2   :  { %v86_v41 = vadd.f32 %v1112_v35, %v84_v37  ;;  %v98_v42 = vadd.f32 %v1114_v36, %v96_v39 }
  0xb4   :  { %v89_v43 = vadd.f32 %v88_v38, %v86_v41  ;;  %v100_v44 = vadd.f32 %v99_v40, %v98_v42 }
  0xb6   :  { %v101_v45 = vmul.f32 0.5, %v89_v43  ;;  %v103_v46 = vmul.f32 0.5, %v100_v44 }
  0xb8   :  { %v102_v47 = vadd.f32 %v101_v45, %v1084_v8  ;;  %v104_v48 = vadd.f32 %v103_v46, %v1091_v10 }
  0xba   :  { %v108_v49 = vrot.slane %v102_v47, %v1079_v7  ;;  %v114_v50 = vrot.slane %v104_v48, %v1079_v7  ;;  %v126_v9 = vmul.f32 %v102_v47, %v1110_v32  ;;  %v136_v13 = vmul.f32 %v104_v48, %v1110_v32 }
  0xbc   :  { %v109_v51 = vmul.f32 %v108_v49, %v1093_v11  ;;  %v115_v53 = vmul.f32 %v114_v50, %v1100_v15 }
  0xbe   :  { %v110_v52 = vadd.f32 %v109_v51, %v1098_v14 }
  0xc0   :  { %v116_v54 = vadd.f32 %v115_v53, %v110_v52 }
  0xc2   :  { %925 = vtanh.f32 %v116_v54 }
  0xcf   :  { %v926_v55 = vpop.eup %925 }
  0xd0   :  { %v118_v56 = vmul.f32 %v926_v55, %v1104_v19  ;;  %v128_v57 = vmul.f32 %v926_v55, %v1106_v20 }
  0xd2   :  { %v119_v58 = vrot.slane %v118_v56, 4  ;;  %v129_v59 = vrot.slane %v128_v57, 4 }
  0xd4   :  { %v120_v60 = vadd.f32 %v119_v58, %v118_v56  ;;  %v130_v61 = vadd.f32 %v129_v59, %v128_v57 }
  0xd6   :  { %v121_v62 = vrot.slane %v120_v60, 2  ;;  %v131_v63 = vrot.slane %v130_v61, 2 }
  0xd8   :  { %v122_v0 = vadd.f32 %v121_v62, %v120_v60  ;;  %v132_v1 = vadd.f32 %v131_v63, %v130_v61 }
  0xda   :  { %v123_v2 = vrot.slane %v122_v0, 1  ;;  %v133_v3 = vrot.slane %v132_v1, 1 }
  0xdc   :  { %v124_v4 = vadd.f32 %v123_v2, %v122_v0  ;;  %v134_v5 = vadd.f32 %v133_v3, %v132_v1 }
  0xde   :  { %v125_v6 = vadd.f32 %v124_v4, %v1112_v35  ;;  %v135_v12 = vadd.f32 %v134_v5, %v1114_v36 }
  0xe0   :  { %v127_v16 = vadd.f32 %v126_v9, %v125_v6  ;;  %v137_v17 = vadd.f32 %v136_v13, %v135_v12 }
  0xe2   :  { %v138_v18 = vmul.f32 0.5, %v127_v16  ;;  %v140_v21 = vmul.f32 0.5, %v137_v17  ;;  %v210_v22 = vmul.f32 2.0, %v127_v16  ;;  %v217_v23 = vmul.f32 2.0, %v137_v17 }
  0xe4   :  { %v139_v24 = vadd.f32 %v138_v18, %v1084_v8  ;;  %v141_v25 = vadd.f32 %v140_v21, %v1091_v10  ;;  %v211_v26 = vadd.f32 %v210_v22, %v89_v43  ;;  %v218_v27 = vadd.f32 %v217_v23, %v100_v44 }
  0xe6   :  { %v145_v28 = vrot.slane %v139_v24, %v1079_v7  ;;  %v151_v29 = vrot.slane %v141_v25, %v1079_v7  ;;  %v163_v53 = vmul.f32 %v139_v24, %v1110_v32  ;;  %v173_v55 = vmul.f32 %v141_v25, %v1110_v32 }
  0xe8   :  { %v146_v30 = vmul.f32 %v145_v28, %v1093_v11  ;;  %v152_v33 = vmul.f32 %v151_v29, %v1100_v15 }
  0xea   :  { %v147_v31 = vadd.f32 %v146_v30, %v1098_v14 }
  0xec   :  { %v153_v34 = vadd.f32 %v152_v33, %v147_v31 }
  0xee   :  { %927 = vtanh.f32 %v153_v34 }
  0xfb   :  { %v928_v37 = vpop.eup %927 }
  0xfc   :  { %v155_v38 = vmul.f32 %v928_v37, %v1104_v19  ;;  %v165_v39 = vmul.f32 %v928_v37, %v1106_v20 }
  0xfe   :  { %v156_v40 = vrot.slane %v155_v38, 4  ;;  %v166_v41 = vrot.slane %v165_v39, 4 }
 0x100   :  { %v157_v42 = vadd.f32 %v156_v40, %v155_v38  ;;  %v167_v43 = vadd.f32 %v166_v41, %v165_v39 }
 0x102   :  { %v158_v44 = vrot.slane %v157_v42, 2  ;;  %v168_v45 = vrot.slane %v167_v43, 2 }
 0x104   :  { %v159_v46 = vadd.f32 %v158_v44, %v157_v42  ;;  %v169_v47 = vadd.f32 %v168_v45, %v167_v43 }
 0x106   :  { %v160_v48 = vrot.slane %v159_v46, 1  ;;  %v170_v49 = vrot.slane %v169_v47, 1 }
 0x108   :  { %v161_v50 = vadd.f32 %v160_v48, %v159_v46  ;;  %v171_v51 = vadd.f32 %v170_v49, %v169_v47 }
 0x10a   :  { %v162_v52 = vadd.f32 %v161_v50, %v1112_v35  ;;  %v172_v54 = vadd.f32 %v171_v51, %v1114_v36 }
 0x10c   :  { %v164_v56 = vadd.f32 %v163_v53, %v162_v52  ;;  %v174_v57 = vadd.f32 %v173_v55, %v172_v54 }
 0x10e   :  { %v175_v58 = vadd.f32 %v164_v56, %v1084_v8  ;;  %v176_v59 = vadd.f32 %v174_v57, %v1091_v10  ;;  %v212_v25 = vmul.f32 2.0, %v164_v56  ;;  %v219_v28 = vmul.f32 2.0, %v174_v57 }
 0x110   :  { %v180_v60 = vrot.slane %v175_v58, %v1079_v7  ;;  %v186_v61 = vrot.slane %v176_v59, %v1079_v7  ;;  %v198_v30 = vmul.f32 %v175_v58, %v1110_v32  ;;  %v208_v33 = vmul.f32 %v176_v59, %v1110_v32 }
 0x111   :  { %v213_v38 = vadd.f32 %v212_v25, %v211_v26  ;;  %v220_v39 = vadd.f32 %v219_v28, %v218_v27 }
 0x112   :  { %v181_v62 = vmul.f32 %v180_v60, %v1093_v11  ;;  %v187_v0 = vmul.f32 %v186_v61, %v1100_v15 }
 0x114   :  { %v182_v63 = vadd.f32 %v181_v62, %v1098_v14 }
 0x116   :  { %v188_v1 = vadd.f32 %v187_v0, %v182_v63 }
 0x118   :  { %929 = vtanh.f32 %v188_v1 }
 0x125   :  { %v930_v2 = vpop.eup %929 }
 0x126   :  { %v190_v3 = vmul.f32 %v930_v2, %v1104_v19  ;;  %v200_v4 = vmul.f32 %v930_v2, %v1106_v20 }
 0x128   :  { %v191_v5 = vrot.slane %v190_v3, 4  ;;  %v201_v6 = vrot.slane %v200_v4, 4 }
 0x12a   :  { %v192_v9 = vadd.f32 %v191_v5, %v190_v3  ;;  %v202_v12 = vadd.f32 %v201_v6, %v200_v4 }
 0x12c   :  { %v193_v13 = vrot.slane %v192_v9, 2  ;;  %v203_v16 = vrot.slane %v202_v12, 2 }
 0x12e   :  { %v194_v17 = vadd.f32 %v193_v13, %v192_v9  ;;  %v204_v18 = vadd.f32 %v203_v16, %v202_v12 }
 0x130   :  { %v195_v21 = vrot.slane %v194_v17, 1  ;;  %v205_v22 = vrot.slane %v204_v18, 1 }
 0x132   :  { %v196_v23 = vadd.f32 %v195_v21, %v194_v17  ;;  %v206_v24 = vadd.f32 %v205_v22, %v204_v18 }
 0x134   :  { %v197_v29 = vadd.f32 %v196_v23, %v1112_v35  ;;  %v207_v31 = vadd.f32 %v206_v24, %v1114_v36 }
 0x136   :  { %v199_v34 = vadd.f32 %v198_v30, %v197_v29  ;;  %v209_v37 = vadd.f32 %v208_v33, %v207_v31 }
 0x138   :  { %v214_v40 = vadd.f32 %v213_v38, %v199_v34  ;;  %v221_v41 = vadd.f32 %v220_v39, %v209_v37 }
 0x13a   :  { %v215_v42 = vmul.f32 0.16666667, %v214_v40  ;;  %v222_v43 = vmul.f32 0.16666667, %v221_v41 }
 0x13c   :  { %v1162_v44 = vadd.f32 %v215_v42, %v1084_v8  ;;  %v1165_v45 = vadd.f32 %v222_v43, %v1091_v10 }
 0x13e   :  { %v227_v46 = vrot.slane %v1162_v44, %v1079_v7  ;;  %v233_v47 = vrot.slane %v1165_v45, %v1079_v7  ;;  %v245_v0 = vmul.f32 %v1162_v44, %v1110_v32  ;;  %v255_v2 = vmul.f32 %v1165_v45, %v1110_v32 }
 0x140   :  { %v228_v48 = vmul.f32 %v227_v46, %v1093_v11  ;;  %v234_v27 = vmul.f32 %v233_v47, %v1100_v15 }
 0x142   :  { %v229_v26 = vadd.f32 %v228_v48, %v1098_v14 }
 0x144   :  { %v235_v49 = vadd.f32 %v234_v27, %v229_v26 }
 0x146   :  { %931 = vtanh.f32 %v235_v49 }
 0x153   :  { %v932_v50 = vpop.eup %931 }
 0x154   :  { %v237_v8 = vmul.f32 %v932_v50, %v1104_v19  ;;  %v247_v10 = vmul.f32 %v932_v50, %v1106_v20 }
 0x156   :  { %v238_v51 = vrot.slane %v237_v8, 4  ;;  %v248_v52 = vrot.slane %v247_v10, 4 }
 0x158   :  { %v239_v53 = vadd.f32 %v238_v51, %v237_v8  ;;  %v249_v54 = vadd.f32 %v248_v52, %v247_v10 }
 0x15a   :  { %v240_v55 = vrot.slane %v239_v53, 2  ;;  %v250_v56 = vrot.slane %v249_v54, 2 }
 0x15c   :  { %v241_v57 = vadd.f32 %v240_v55, %v239_v53  ;;  %v251_v58 = vadd.f32 %v250_v56, %v249_v54 }
 0x15e   :  { %v242_v59 = vrot.slane %v241_v57, 1  ;;  %v252_v60 = vrot.slane %v251_v58, 1 }
 0x160   :  { %v243_v61 = vadd.f32 %v242_v59, %v241_v57  ;;  %v253_v62 = vadd.f32 %v252_v60, %v251_v58 }
 0x162   :  { %v244_v63 = vadd.f32 %v243_v61, %v1112_v35  ;;  %v254_v1 = vadd.f32 %v253_v62, %v1114_v36 }
 0x164   :  { %v246_v3 = vadd.f32 %v245_v0, %v244_v63  ;;  %v256_v4 = vadd.f32 %v255_v2, %v254_v1 }
 0x166   :  { %v257_v5 = vmul.f32 0.5, %v246_v3  ;;  %v259_v6 = vmul.f32 0.5, %v256_v4 }
 0x168   :  { %v258_v9 = vadd.f32 %v257_v5, %v1162_v44  ;;  %v260_v12 = vadd.f32 %v259_v6, %v1165_v45 }
 0x16a   :  { %v264_v13 = vrot.slane %v258_v9, %v1079_v7  ;;  %v270_v16 = vrot.slane %v260_v12, %v1079_v7  ;;  %v282_v46 = vmul.f32 %v258_v9, %v1110_v32  ;;  %v292_v48 = vmul.f32 %v260_v12, %v1110_v32 }
 0x16c   :  { %v265_v17 = vmul.f32 %v264_v13, %v1093_v11  ;;  %v271_v21 = vmul.f32 %v270_v16, %v1100_v15 }
 0x16e   :  { %v266_v18 = vadd.f32 %v265_v17, %v1098_v14 }
 0x170   :  { %v272_v22 = vadd.f32 %v271_v21, %v266_v18 }
 0x172   :  { %933 = vtanh.f32 %v272_v22 }
 0x17f   :  { %v934_v23 = vpop.eup %933 }
 0x180   :  { %v274_v24 = vmul.f32 %v934_v23, %v1104_v19  ;;  %v284_v25 = vmul.f32 %v934_v23, %v1106_v20 }
 0x182   :  { %v275_v28 = vrot.slane %v274_v24, 4  ;;  %v285_v29 = vrot.slane %v284_v25, 4 }
 0x184   :  { %v276_v30 = vadd.f32 %v275_v28, %v274_v24  ;;  %v286_v31 = vadd.f32 %v285_v29, %v284_v25 }
 0x186   :  { %v277_v33 = vrot.slane %v276_v30, 2  ;;  %v287_v34 = vrot.slane %v286_v31, 2 }
 0x188   :  { %v278_v37 = vadd.f32 %v277_v33, %v276_v30  ;;  %v288_v38 = vadd.f32 %v287_v34, %v286_v31 }
 0x18a   :  { %v279_v39 = vrot.slane %v278_v37, 1  ;;  %v289_v40 = vrot.slane %v288_v38, 1 }
 0x18c   :  { %v280_v41 = vadd.f32 %v279_v39, %v278_v37  ;;  %v290_v42 = vadd.f32 %v289_v40, %v288_v38 }
 0x18e   :  { %v281_v43 = vadd.f32 %v280_v41, %v1112_v35  ;;  %v291_v47 = vadd.f32 %v290_v42, %v1114_v36 }
 0x190   :  { %v283_v26 = vadd.f32 %v282_v46, %v281_v43  ;;  %v293_v27 = vadd.f32 %v292_v48, %v291_v47 }
 0x192   :  { %v294_v49 = vmul.f32 0.5, %v283_v26  ;;  %v296_v50 = vmul.f32 0.5, %v293_v27  ;;  %v366_v8 = vmul.f32 2.0, %v283_v26  ;;  %v373_v10 = vmul.f32 2.0, %v293_v27 }
 0x194   :  { %v295_v51 = vadd.f32 %v294_v49, %v1162_v44  ;;  %v297_v52 = vadd.f32 %v296_v50, %v1165_v45  ;;  %v367_v53 = vadd.f32 %v366_v8, %v246_v3  ;;  %v374_v54 = vadd.f32 %v373_v10, %v256_v4 }
 0x196   :  { %v301_v55 = vrot.slane %v295_v51, %v1079_v7  ;;  %v307_v56 = vrot.slane %v297_v52, %v1079_v7  ;;  %v319_v21 = vmul.f32 %v295_v51, %v1110_v32  ;;  %v329_v23 = vmul.f32 %v297_v52, %v1110_v32 }
 0x198   :  { %v302_v57 = vmul.f32 %v301_v55, %v1093_v11  ;;  %v308_v59 = vmul.f32 %v307_v56, %v1100_v15 }
 0x19a   :  { %v303_v58 = vadd.f32 %v302_v57, %v1098_v14 }
 0x19c   :  { %v309_v60 = vadd.f32 %v308_v59, %v303_v58 }
 0x19e   :  { %935 = vtanh.f32 %v309_v60 }
 0x1ab   :  { %v936_v61 = vpop.eup %935 }
 0x1ac   :  { %v311_v62 = vmul.f32 %v936_v61, %v1104_v19  ;;  %v321_v63 = vmul.f32 %v936_v61, %v1106_v20 }
 0x1ae   :  { %v312_v0 = vrot.slane %v311_v62, 4  ;;  %v322_v1 = vrot.slane %v321_v63, 4 }
 0x1b0   :  { %v313_v2 = vadd.f32 %v312_v0, %v311_v62  ;;  %v323_v3 = vadd.f32 %v322_v1, %v321_v63 }
 0x1b2   :  { %v314_v4 = vrot.slane %v313_v2, 2  ;;  %v324_v5 = vrot.slane %v323_v3, 2 }
 0x1b4   :  { %v315_v6 = vadd.f32 %v314_v4, %v313_v2  ;;  %v325_v9 = vadd.f32 %v324_v5, %v323_v3 }
 0x1b6   :  { %v316_v12 = vrot.slane %v315_v6, 1  ;;  %v326_v13 = vrot.slane %v325_v9, 1 }
 0x1b8   :  { %v317_v16 = vadd.f32 %v316_v12, %v315_v6  ;;  %v327_v17 = vadd.f32 %v326_v13, %v325_v9 }
 0x1ba   :  { %v318_v18 = vadd.f32 %v317_v16, %v1112_v35  ;;  %v328_v22 = vadd.f32 %v327_v17, %v1114_v36 }
 0x1bc   :  { %v320_v24 = vadd.f32 %v319_v21, %v318_v18  ;;  %v330_v25 = vadd.f32 %v329_v23, %v328_v22 }
 0x1be   :  { %v331_v28 = vadd.f32 %v320_v24, %v1162_v44  ;;  %v332_v29 = vadd.f32 %v330_v25, %v1165_v45  ;;  %v368_v52 = vmul.f32 2.0, %v320_v24  ;;  %v375_v55 = vmul.f32 2.0, %v330_v25 }
 0x1c0   :  { %v336_v30 = vrot.slane %v331_v28, %v1079_v7  ;;  %v342_v31 = vrot.slane %v332_v29, %v1079_v7  ;;  %v354_v57 = vmul.f32 %v331_v28, %v1110_v32  ;;  %v364_v59 = vmul.f32 %v332_v29, %v1110_v32 }
 0x1c1   :  { %v369_v62 = vadd.f32 %v368_v52, %v367_v53  ;;  %v376_v63 = vadd.f32 %v375_v55, %v374_v54 }
 0x1c2   :  { %v337_v33 = vmul.f32 %v336_v30, %v1093_v11  ;;  %v343_v37 = vmul.f32 %v342_v31, %v1100_v15 }
 0x1c4   :  { %v338_v34 = vadd.f32 %v337_v33, %v1098_v14 }
 0x1c6   :  { %v344_v38 = vadd.f32 %v343_v37, %v338_v34 }
 0x1c8   :  { %937 = vtanh.f32 %v344_v38 }
 0x1d5   :  { %v938_v39 = vpop.eup %937 }
 0x1d6   :  { %v346_v40 = vmul.f32 %v938_v39, %v1104_v19  ;;  %v356_v41 = vmul.f32 %v938_v39, %v1106_v20 }
 0x1d8   :  { %v347_v42 = vrot.slane %v346_v40, 4  ;;  %v357_v43 = vrot.slane %v356_v41, 4 }
 0x1da   :  { %v348_v46 = vadd.f32 %v347_v42, %v346_v40  ;;  %v358_v47 = vadd.f32 %v357_v43, %v356_v41 }
 0x1dc   :  { %v349_v48 = vrot.slane %v348_v46, 2  ;;  %v359_v26 = vrot.slane %v358_v47, 2 }
 0x1de   :  { %v350_v27 = vadd.f32 %v349_v48, %v348_v46  ;;  %v360_v49 = vadd.f32 %v359_v26, %v358_v47 }
 0x1e0   :  { %v351_v50 = vrot.slane %v350_v27, 1  ;;  %v361_v8 = vrot.slane %v360_v49, 1 }
 0x1e2   :  { %v352_v10 = vadd.f32 %v351_v50, %v350_v27  ;;  %v362_v51 = vadd.f32 %v361_v8, %v360_v49 }
 0x1e4   :  { %v353_v56 = vadd.f32 %v352_v10, %v1112_v35  ;;  %v363_v58 = vadd.f32 %v362_v51, %v1114_v36 }
 0x1e6   :  { %v355_v60 = vadd.f32 %v354_v57, %v353_v56  ;;  %v365_v61 = vadd.f32 %v364_v59, %v363_v58 }
 0x1e8   :  { %v370_v0 = vadd.f32 %v369_v62, %v355_v60  ;;  %v377_v1 = vadd.f32 %v376_v63, %v365_v61 }
 0x1ea   :  { %v371_v2 = vmul.f32 0.16666667, %v370_v0  ;;  %v378_v3 = vmul.f32 0.16666667, %v377_v1 }
 0x1ec   :  { %v1222_v4 = vadd.f32 %v371_v2, %v1162_v44  ;;  %v1225_v5 = vadd.f32 %v378_v3, %v1165_v45 }
 0x1ee   :  { %v383_v6 = vrot.slane %v1222_v4, %v1079_v7  ;;  %v389_v9 = vrot.slane %v1225_v5, %v1079_v7  ;;  %v401_v37 = vmul.f32 %v1222_v4, %v1110_v32  ;;  %v411_v39 = vmul.f32 %v1225_v5, %v1110_v32 }
 0x1f0   :  { %v384_v12 = vmul.f32 %v383_v6, %v1093_v11  ;;  %v390_v54 = vmul.f32 %v389_v9, %v1100_v15 }
 0x1f2   :  { %v385_v53 = vadd.f32 %v384_v12, %v1098_v14 }
 0x1f4   :  { %v391_v13 = vadd.f32 %v390_v54, %v385_v53 }
 0x1f6   :  { %939 = vtanh.f32 %v391_v13 }
 0x203   :  { %v940_v16 = vpop.eup %939 }
 0x204   :  { %v393_v44 = vmul.f32 %v940_v16, %v1104_v19  ;;  %v403_v45 = vmul.f32 %v940_v16, %v1106_v20 }
 0x206   :  { %v394_v17 = vrot.slane %v393_v44, 4  ;;  %v404_v18 = vrot.slane %v403_v45, 4 }
 0x208   :  { %v395_v21 = vadd.f32 %v394_v17, %v393_v44  ;;  %v405_v22 = vadd.f32 %v404_v18, %v403_v45 }
 0x20a   :  { %v396_v23 = vrot.slane %v395_v21, 2  ;;  %v406_v24 = vrot.slane %v405_v22, 2 }
 0x20c   :  { %v397_v25 = vadd.f32 %v396_v23, %v395_v21  ;;  %v407_v28 = vadd.f32 %v406_v24, %v405_v22 }
 0x20e   :  { %v398_v29 = vrot.slane %v397_v25, 1  ;;  %v408_v30 = vrot.slane %v407_v28, 1 }
 0x210   :  { %v399_v31 = vadd.f32 %v398_v29, %v397_v25  ;;  %v409_v33 = vadd.f32 %v408_v30, %v407_v28 }
 0x212   :  { %v400_v34 = vadd.f32 %v399_v31, %v1112_v35  ;;  %v410_v38 = vadd.f32 %v409_v33, %v1114_v36 }
 0x214   :  { %v402_v40 = vadd.f32 %v401_v37, %v400_v34  ;;  %v412_v41 = vadd.f32 %v411_v39, %v410_v38 }
 0x216   :  { %v413_v42 = vmul.f32 0.5, %v402_v40  ;;  %v415_v43 = vmul.f32 0.5, %v412_v41 }
 0x218   :  { %v414_v46 = vadd.f32 %v413_v42, %v1222_v4  ;;  %v416_v47 = vadd.f32 %v415_v43, %v1225_v5 }
 0x21a   :  { %v420_v48 = vrot.slane %v414_v46, %v1079_v7  ;;  %v426_v26 = vrot.slane %v416_v47, %v1079_v7  ;;  %v438_v6 = vmul.f32 %v414_v46, %v1110_v32  ;;  %v448_v12 = vmul.f32 %v416_v47, %v1110_v32 }
 0x21c   :  { %v421_v27 = vmul.f32 %v420_v48, %v1093_v11  ;;  %v427_v50 = vmul.f32 %v426_v26, %v1100_v15 }
 0x21e   :  { %v422_v49 = vadd.f32 %v421_v27, %v1098_v14 }
 0x220   :  { %v428_v8 = vadd.f32 %v427_v50, %v422_v49 }
 0x222   :  { %941 = vtanh.f32 %v428_v8 }
 0x22f   :  { %v942_v10 = vpop.eup %941 }
 0x230   :  { %v430_v51 = vmul.f32 %v942_v10, %v1104_v19  ;;  %v440_v52 = vmul.f32 %v942_v10, %v1106_v20 }
 0x232   :  { %v431_v55 = vrot.slane %v430_v51, 4  ;;  %v441_v56 = vrot.slane %v440_v52, 4 }
 0x234   :  { %v432_v57 = vadd.f32 %v431_v55, %v430_v51  ;;  %v442_v58 = vadd.f32 %v441_v56, %v440_v52 }
 0x236   :  { %v433_v59 = vrot.slane %v432_v57, 2  ;;  %v443_v60 = vrot.slane %v442_v58, 2 }
 0x238   :  { %v434_v61 = vadd.f32 %v433_v59, %v432_v57  ;;  %v444_v62 = vadd.f32 %v443_v60, %v442_v58 }
 0x23a   :  { %v435_v63 = vrot.slane %v434_v61, 1  ;;  %v445_v0 = vrot.slane %v444_v62, 1 }
 0x23c   :  { %v436_v1 = vadd.f32 %v435_v63, %v434_v61  ;;  %v446_v2 = vadd.f32 %v445_v0, %v444_v62 }
 0x23e   :  { %v437_v3 = vadd.f32 %v436_v1, %v1112_v35  ;;  %v447_v9 = vadd.f32 %v446_v2, %v1114_v36 }
 0x240   :  { %v439_v53 = vadd.f32 %v438_v6, %v437_v3  ;;  %v449_v54 = vadd.f32 %v448_v12, %v447_v9 }
 0x242   :  { %v450_v13 = vmul.f32 0.5, %v439_v53  ;;  %v452_v16 = vmul.f32 0.5, %v449_v54  ;;  %v522_v44 = vmul.f32 2.0, %v439_v53  ;;  %v529_v45 = vmul.f32 2.0, %v449_v54 }
 0x244   :  { %v451_v17 = vadd.f32 %v450_v13, %v1222_v4  ;;  %v453_v18 = vadd.f32 %v452_v16, %v1225_v5  ;;  %v523_v21 = vadd.f32 %v522_v44, %v402_v40  ;;  %v530_v22 = vadd.f32 %v529_v45, %v412_v41 }
 0x246   :  { %v457_v23 = vrot.slane %v451_v17, %v1079_v7  ;;  %v463_v24 = vrot.slane %v453_v18, %v1079_v7  ;;  %v475_v50 = vmul.f32 %v451_v17, %v1110_v32  ;;  %v485_v10 = vmul.f32 %v453_v18, %v1110_v32 }
 0x248   :  { %v458_v25 = vmul.f32 %v457_v23, %v1093_v11  ;;  %v464_v29 = vmul.f32 %v463_v24, %v1100_v15 }
 0x24a   :  { %v459_v28 = vadd.f32 %v458_v25, %v1098_v14 }
 0x24c   :  { %v465_v30 = vadd.f32 %v464_v29, %v459_v28 }
 0x24e   :  { %943 = vtanh.f32 %v465_v30 }
 0x25b   :  { %v944_v31 = vpop.eup %943 }
 0x25c   :  { %v467_v33 = vmul.f32 %v944_v31, %v1104_v19  ;;  %v477_v34 = vmul.f32 %v944_v31, %v1106_v20 }
 0x25e   :  { %v468_v37 = vrot.slane %v467_v33, 4  ;;  %v478_v38 = vrot.slane %v477_v34, 4 }
 0x260   :  { %v469_v39 = vadd.f32 %v468_v37, %v467_v33  ;;  %v479_v40 = vadd.f32 %v478_v38, %v477_v34 }
 0x262   :  { %v470_v41 = vrot.slane %v469_v39, 2  ;;  %v480_v42 = vrot.slane %v479_v40, 2 }
 0x264   :  { %v471_v43 = vadd.f32 %v470_v41, %v469_v39  ;;  %v481_v46 = vadd.f32 %v480_v42, %v479_v40 }
 0x266   :  { %v472_v47 = vrot.slane %v471_v43, 1  ;;  %v482_v48 = vrot.slane %v481_v46, 1 }
 0x268   :  { %v473_v26 = vadd.f32 %v472_v47, %v471_v43  ;;  %v483_v27 = vadd.f32 %v482_v48, %v481_v46 }
 0x26a   :  { %v474_v49 = vadd.f32 %v473_v26, %v1112_v35  ;;  %v484_v8 = vadd.f32 %v483_v27, %v1114_v36 }
 0x26c   :  { %v476_v51 = vadd.f32 %v475_v50, %v474_v49  ;;  %v486_v52 = vadd.f32 %v485_v10, %v484_v8 }
 0x26e   :  { %v487_v55 = vadd.f32 %v476_v51, %v1222_v4  ;;  %v488_v56 = vadd.f32 %v486_v52, %v1225_v5  ;;  %v524_v18 = vmul.f32 2.0, %v476_v51  ;;  %v531_v23 = vmul.f32 2.0, %v486_v52 }
 0x270   :  { %v492_v57 = vrot.slane %v487_v55, %v1079_v7  ;;  %v498_v58 = vrot.slane %v488_v56, %v1079_v7  ;;  %v510_v25 = vmul.f32 %v487_v55, %v1110_v32  ;;  %v520_v29 = vmul.f32 %v488_v56, %v1110_v32 }
 0x271   :  { %v525_v33 = vadd.f32 %v524_v18, %v523_v21  ;;  %v532_v34 = vadd.f32 %v531_v23, %v530_v22 }
 0x272   :  { %v493_v59 = vmul.f32 %v492_v57, %v1093_v11  ;;  %v499_v61 = vmul.f32 %v498_v58, %v1100_v15 }
 0x274   :  { %v494_v60 = vadd.f32 %v493_v59, %v1098_v14 }
 0x276   :  { %v500_v62 = vadd.f32 %v499_v61, %v494_v60 }
 0x278   :  { %945 = vtanh.f32 %v500_v62 }
 0x285   :  { %v946_v63 = vpop.eup %945 }
 0x286   :  { %v502_v0 = vmul.f32 %v946_v63, %v1104_v19  ;;  %v512_v1 = vmul.f32 %v946_v63, %v1106_v20 }
 0x288   :  { %v503_v2 = vrot.slane %v502_v0, 4  ;;  %v513_v3 = vrot.slane %v512_v1, 4 }
 0x28a   :  { %v504_v6 = vadd.f32 %v503_v2, %v502_v0  ;;  %v514_v9 = vadd.f32 %v513_v3, %v512_v1 }
 0x28c   :  { %v505_v12 = vrot.slane %v504_v6, 2  ;;  %v515_v53 = vrot.slane %v514_v9, 2 }
 0x28e   :  { %v506_v54 = vadd.f32 %v505_v12, %v504_v6  ;;  %v516_v13 = vadd.f32 %v515_v53, %v514_v9 }
 0x290   :  { %v507_v16 = vrot.slane %v506_v54, 1  ;;  %v517_v44 = vrot.slane %v516_v13, 1 }
 0x292   :  { %v508_v45 = vadd.f32 %v507_v16, %v506_v54  ;;  %v518_v17 = vadd.f32 %v517_v44, %v516_v13 }
 0x294   :  { %v509_v24 = vadd.f32 %v508_v45, %v1112_v35  ;;  %v519_v28 = vadd.f32 %v518_v17, %v1114_v36 }
 0x296   :  { %v511_v30 = vadd.f32 %v510_v25, %v509_v24  ;;  %v521_v31 = vadd.f32 %v520_v29, %v519_v28 }
 0x298   :  { %v526_v37 = vadd.f32 %v525_v33, %v511_v30  ;;  %v533_v38 = vadd.f32 %v532_v34, %v521_v31 }
 0x29a   :  { %v527_v39 = vmul.f32 0.16666667, %v526_v37  ;;  %v534_v40 = vmul.f32 0.16666667, %v533_v38 }
 0x29c   :  { %v1282_v41 = vadd.f32 %v527_v39, %v1222_v4  ;;  %v1285_v42 = vadd.f32 %v534_v40, %v1225_v5 }
 0x29e   :  { %v539_v43 = vrot.slane %v1282_v41, %v1079_v7  ;;  %v545_v46 = vrot.slane %v1285_v42, %v1079_v7  ;;  %v557_v61 = vmul.f32 %v1282_v41, %v1110_v32  ;;  %v567_v63 = vmul.f32 %v1285_v42, %v1110_v32 }
 0x2a0   :  { %v540_v47 = vmul.f32 %v539_v43, %v1093_v11  ;;  %v546_v22 = vmul.f32 %v545_v46, %v1100_v15 }
 0x2a2   :  { %v541_v21 = vadd.f32 %v540_v47, %v1098_v14 }
 0x2a4   :  { %v547_v48 = vadd.f32 %v546_v22, %v541_v21 }
 0x2a6   :  { %947 = vtanh.f32 %v547_v48 }
 0x2b3   :  { %v948_v26 = vpop.eup %947 }
 0x2b4   :  { %v549_v4 = vmul.f32 %v948_v26, %v1104_v19  ;;  %v559_v5 = vmul.f32 %v948_v26, %v1106_v20 }
 0x2b6   :  { %v550_v27 = vrot.slane %v549_v4, 4  ;;  %v560_v49 = vrot.slane %v559_v5, 4 }
 0x2b8   :  { %v551_v50 = vadd.f32 %v550_v27, %v549_v4  ;;  %v561_v8 = vadd.f32 %v560_v49, %v559_v5 }
 0x2ba   :  { %v552_v10 = vrot.slane %v551_v50, 2  ;;  %v562_v51 = vrot.slane %v561_v8, 2 }
 0x2bc   :  { %v553_v52 = vadd.f32 %v552_v10, %v551_v50  ;;  %v563_v55 = vadd.f32 %v562_v51, %v561_v8 }
 0x2be   :  { %v554_v56 = vrot.slane %v553_v52, 1  ;;  %v564_v57 = vrot.slane %v563_v55, 1 }
 0x2c0   :  { %v555_v58 = vadd.f32 %v554_v56, %v553_v52  ;;  %v565_v59 = vadd.f32 %v564_v57, %v563_v55 }
 0x2c2   :  { %v556_v60 = vadd.f32 %v555_v58, %v1112_v35  ;;  %v566_v62 = vadd.f32 %v565_v59, %v1114_v36 }
 0x2c4   :  { %v558_v0 = vadd.f32 %v557_v61, %v556_v60  ;;  %v568_v1 = vadd.f32 %v567_v63, %v566_v62 }
 0x2c6   :  { %v569_v2 = vmul.f32 0.5, %v558_v0  ;;  %v571_v3 = vmul.f32 0.5, %v568_v1 }
 0x2c8   :  { %v570_v6 = vadd.f32 %v569_v2, %v1282_v41  ;;  %v572_v9 = vadd.f32 %v571_v3, %v1285_v42 }
 0x2ca   :  { %v576_v12 = vrot.slane %v570_v6, %v1079_v7  ;;  %v582_v53 = vrot.slane %v572_v9, %v1079_v7  ;;  %v594_v43 = vmul.f32 %v570_v6, %v1110_v32  ;;  %v604_v47 = vmul.f32 %v572_v9, %v1110_v32 }
 0x2cc   :  { %v577_v54 = vmul.f32 %v576_v12, %v1093_v11  ;;  %v583_v16 = vmul.f32 %v582_v53, %v1100_v15 }
 0x2ce   :  { %v578_v13 = vadd.f32 %v577_v54, %v1098_v14 }
 0x2d0   :  { %v584_v44 = vadd.f32 %v583_v16, %v578_v13 }
 0x2d2   :  { %949 = vtanh.f32 %v584_v44 }
 0x2df   :  { %v950_v45 = vpop.eup %949 }
 0x2e0   :  { %v586_v17 = vmul.f32 %v950_v45, %v1104_v19  ;;  %v596_v18 = vmul.f32 %v950_v45, %v1106_v20 }
 0x2e2   :  { %v587_v23 = vrot.slane %v586_v17, 4  ;;  %v597_v24 = vrot.slane %v596_v18, 4 }
 0x2e4   :  { %v588_v25 = vadd.f32 %v587_v23, %v586_v17  ;;  %v598_v28 = vadd.f32 %v597_v24, %v596_v18 }
 0x2e6   :  { %v589_v29 = vrot.slane %v588_v25, 2  ;;  %v599_v30 = vrot.slane %v598_v28, 2 }
 0x2e8   :  { %v590_v31 = vadd.f32 %v589_v29, %v588_v25  ;;  %v600_v33 = vadd.f32 %v599_v30, %v598_v28 }
 0x2ea   :  { %v591_v34 = vrot.slane %v590_v31, 1  ;;  %v601_v37 = vrot.slane %v600_v33, 1 }
 0x2ec   :  { %v592_v38 = vadd.f32 %v591_v34, %v590_v31  ;;  %v602_v39 = vadd.f32 %v601_v37, %v600_v33 }
 0x2ee   :  { %v593_v40 = vadd.f32 %v592_v38, %v1112_v35  ;;  %v603_v46 = vadd.f32 %v602_v39, %v1114_v36 }
 0x2f0   :  { %v595_v21 = vadd.f32 %v594_v43, %v593_v40  ;;  %v605_v22 = vadd.f32 %v604_v47, %v603_v46 }
 0x2f2   :  { %v606_v48 = vmul.f32 0.5, %v595_v21  ;;  %v608_v26 = vmul.f32 0.5, %v605_v22  ;;  %v678_v4 = vmul.f32 2.0, %v595_v21  ;;  %v685_v5 = vmul.f32 2.0, %v605_v22 }
 0x2f4   :  { %v607_v27 = vadd.f32 %v606_v48, %v1282_v41  ;;  %v609_v49 = vadd.f32 %v608_v26, %v1285_v42  ;;  %v679_v50 = vadd.f32 %v678_v4, %v558_v0  ;;  %v686_v8 = vadd.f32 %v685_v5, %v568_v1 }
 0x2f6   :  { %v613_v10 = vrot.slane %v607_v27, %v1079_v7  ;;  %v619_v51 = vrot.slane %v609_v49, %v1079_v7  ;;  %v631_v16 = vmul.f32 %v607_v27, %v1110_v32  ;;  %v641_v45 = vmul.f32 %v609_v49, %v1110_v32 }
 0x2f8   :  { %v614_v52 = vmul.f32 %v613_v10, %v1093_v11  ;;  %v620_v56 = vmul.f32 %v619_v51, %v1100_v15 }
 0x2fa   :  { %v615_v55 = vadd.f32 %v614_v52, %v1098_v14 }
 0x2fc   :  { %v621_v57 = vadd.f32 %v620_v56, %v615_v55 }
 0x2fe   :  { %951 = vtanh.f32 %v621_v57 }
 0x30b   :  { %v952_v58 = vpop.eup %951 }
 0x30c   :  { %v623_v59 = vmul.f32 %v952_v58, %v1104_v19  ;;  %v633_v60 = vmul.f32 %v952_v58, %v1106_v20 }
 0x30e   :  { %v624_v61 = vrot.slane %v623_v59, 4  ;;  %v634_v62 = vrot.slane %v633_v60, 4 }
 0x310   :  { %v625_v63 = vadd.f32 %v624_v61, %v623_v59  ;;  %v635_v0 = vadd.f32 %v634_v62, %v633_v60 }
 0x312   :  { %v626_v1 = vrot.slane %v625_v63, 2  ;;  %v636_v2 = vrot.slane %v635_v0, 2 }
 0x314   :  { %v627_v3 = vadd.f32 %v626_v1, %v625_v63  ;;  %v637_v6 = vadd.f32 %v636_v2, %v635_v0 }
 0x316   :  { %v628_v9 = vrot.slane %v627_v3, 1  ;;  %v638_v12 = vrot.slane %v637_v6, 1 }
 0x318   :  { %v629_v53 = vadd.f32 %v628_v9, %v627_v3  ;;  %v639_v54 = vadd.f32 %v638_v12, %v637_v6 }
 0x31a   :  { %v630_v13 = vadd.f32 %v629_v53, %v1112_v35  ;;  %v640_v44 = vadd.f32 %v639_v54, %v1114_v36 }
 0x31c   :  { %v632_v17 = vadd.f32 %v631_v16, %v630_v13  ;;  %v642_v18 = vadd.f32 %v641_v45, %v640_v44 }
 0x31e   :  { %v643_v23 = vadd.f32 %v632_v17, %v1282_v41  ;;  %v644_v24 = vadd.f32 %v642_v18, %v1285_v42  ;;  %v680_v49 = vmul.f32 2.0, %v632_v17  ;;  %v687_v10 = vmul.f32 2.0, %v642_v18 }
 0x320   :  { %v648_v25 = vrot.slane %v643_v23, %v1079_v7  ;;  %v654_v28 = vrot.slane %v644_v24, %v1079_v7  ;;  %v666_v52 = vmul.f32 %v643_v23, %v1110_v32  ;;  %v676_v56 = vmul.f32 %v644_v24, %v1110_v32 }
 0x321   :  { %v681_v59 = vadd.f32 %v680_v49, %v679_v50  ;;  %v688_v60 = vadd.f32 %v687_v10, %v686_v8 }
 0x322   :  { %v649_v29 = vmul.f32 %v648_v25, %v1093_v11  ;;  %v655_v31 = vmul.f32 %v654_v28, %v1100_v15 }
 0x324   :  { %v650_v30 = vadd.f32 %v649_v29, %v1098_v14 }
 0x326   :  { %v656_v33 = vadd.f32 %v655_v31, %v650_v30 }
 0x328   :  { %953 = vtanh.f32 %v656_v33 }
 0x335   :  { %v954_v34 = vpop.eup %953 }
 0x336   :  { %v658_v37 = vmul.f32 %v954_v34, %v1104_v19  ;;  %v668_v38 = vmul.f32 %v954_v34, %v1106_v20 }
 0x338   :  { %v659_v39 = vrot.slane %v658_v37, 4  ;;  %v669_v40 = vrot.slane %v668_v38, 4 }
 0x33a   :  { %v660_v43 = vadd.f32 %v659_v39, %v658_v37  ;;  %v670_v46 = vadd.f32 %v669_v40, %v668_v38 }
 0x33c   :  { %v661_v47 = vrot.slane %v660_v43, 2  ;;  %v671_v21 = vrot.slane %v670_v46, 2 }
 0x33e   :  { %v662_v22 = vadd.f32 %v661_v47, %v660_v43  ;;  %v672_v48 = vadd.f32 %v671_v21, %v670_v46 }
 0x340   :  { %v663_v26 = vrot.slane %v662_v22, 1  ;;  %v673_v4 = vrot.slane %v672_v48, 1 }
 0x342   :  { %v664_v5 = vadd.f32 %v663_v26, %v662_v22  ;;  %v674_v27 = vadd.f32 %v673_v4, %v672_v48 }
 0x344   :  { %v665_v51 = vadd.f32 %v664_v5, %v1112_v35  ;;  %v675_v55 = vadd.f32 %v674_v27, %v1114_v36 }
 0x346   :  { %v667_v57 = vadd.f32 %v666_v52, %v665_v51  ;;  %v677_v58 = vadd.f32 %v676_v56, %v675_v55 }
 0x348   :  { %v682_v61 = vadd.f32 %v681_v59, %v667_v57  ;;  %v689_v62 = vadd.f32 %v688_v60, %v677_v58 }
 0x34a   :  { %v683_v63 = vmul.f32 0.16666667, %v682_v61  ;;  %v690_v0 = vmul.f32 0.16666667, %v689_v62 }
 0x34c   :  { %v1342_v1 = vadd.f32 %v683_v63, %v1282_v41  ;;  %v1345_v2 = vadd.f32 %v690_v0, %v1285_v42 }
 0x34e   :  { %v695_v3 = vrot.slane %v1342_v1, %v1079_v7  ;;  %v701_v6 = vrot.slane %v1345_v2, %v1079_v7  ;;  %v713_v31 = vmul.f32 %v1342_v1, %v1110_v32  ;;  %v723_v34 = vmul.f32 %v1345_v2, %v1110_v32 }
 0x350   :  { %v696_v9 = vmul.f32 %v695_v3, %v1093_v11  ;;  %v702_v8 = vmul.f32 %v701_v6, %v1100_v15 }
 0x352   :  { %v697_v50 = vadd.f32 %v696_v9, %v1098_v14 }
 0x354   :  { %v703_v12 = vadd.f32 %v702_v8, %v697_v50 }
 0x356   :  { %955 = vtanh.f32 %v703_v12 }
 0x363   :  { %v956_v53 = vpop.eup %955 }
 0x364   :  { %v705_v41 = vmul.f32 %v956_v53, %v1104_v19  ;;  %v715_v42 = vmul.f32 %v956_v53, %v1106_v20 }
 0x366   :  { %v706_v54 = vrot.slane %v705_v41, 4  ;;  %v716_v13 = vrot.slane %v715_v42, 4 }
 0x368   :  { %v707_v16 = vadd.f32 %v706_v54, %v705_v41  ;;  %v717_v44 = vadd.f32 %v716_v13, %v715_v42 }
 0x36a   :  { %v708_v45 = vrot.slane %v707_v16, 2  ;;  %v718_v17 = vrot.slane %v717_v44, 2 }
 0x36c   :  { %v709_v18 = vadd.f32 %v708_v45, %v707_v16  ;;  %v719_v23 = vadd.f32 %v718_v17, %v717_v44 }
 0x36e   :  { %v710_v24 = vrot.slane %v709_v18, 1  ;;  %v720_v25 = vrot.slane %v719_v23, 1 }
 0x370   :  { %v711_v28 = vadd.f32 %v710_v24, %v709_v18  ;;  %v721_v29 = vadd.f32 %v720_v25, %v719_v23 }
 0x372   :  { %v712_v30 = vadd.f32 %v711_v28, %v1112_v35  ;;  %v722_v33 = vadd.f32 %v721_v29, %v1114_v36 }
 0x374   :  { %v714_v37 = vadd.f32 %v713_v31, %v712_v30  ;;  %v724_v38 = vadd.f32 %v723_v34, %v722_v33 }
 0x376   :  { %v725_v39 = vmul.f32 0.5, %v714_v37  ;;  %v727_v40 = vmul.f32 0.5, %v724_v38 }
 0x378   :  { %v726_v43 = vadd.f32 %v725_v39, %v1342_v1  ;;  %v728_v46 = vadd.f32 %v727_v40, %v1345_v2 }
 0x37a   :  { %v732_v47 = vrot.slane %v726_v43, %v1079_v7  ;;  %v738_v21 = vrot.slane %v728_v46, %v1079_v7  ;;  %v750_v3 = vmul.f32 %v726_v43, %v1110_v32  ;;  %v760_v9 = vmul.f32 %v728_v46, %v1110_v32 }
 0x37c   :  { %v733_v22 = vmul.f32 %v732_v47, %v1093_v11  ;;  %v739_v26 = vmul.f32 %v738_v21, %v1100_v15 }
 0x37e   :  { %v734_v48 = vadd.f32 %v733_v22, %v1098_v14 }
 0x380   :  { %v740_v4 = vadd.f32 %v739_v26, %v734_v48 }
 0x382   :  { %957 = vtanh.f32 %v740_v4 }
 0x38f   :  { %v958_v5 = vpop.eup %957 }
 0x390   :  { %v742_v27 = vmul.f32 %v958_v5, %v1104_v19  ;;  %v752_v49 = vmul.f32 %v958_v5, %v1106_v20 }
 0x392   :  { %v743_v10 = vrot.slane %v742_v27, 4  ;;  %v753_v51 = vrot.slane %v752_v49, 4 }
 0x394   :  { %v744_v52 = vadd.f32 %v743_v10, %v742_v27  ;;  %v754_v55 = vadd.f32 %v753_v51, %v752_v49 }
 0x396   :  { %v745_v56 = vrot.slane %v744_v52, 2  ;;  %v755_v57 = vrot.slane %v754_v55, 2 }
 0x398   :  { %v746_v58 = vadd.f32 %v745_v56, %v744_v52  ;;  %v756_v59 = vadd.f32 %v755_v57, %v754_v55 }
 0x39a   :  { %v747_v60 = vrot.slane %v746_v58, 1  ;;  %v757_v61 = vrot.slane %v756_v59, 1 }
 0x39c   :  { %v748_v62 = vadd.f32 %v747_v60, %v746_v58  ;;  %v758_v63 = vadd.f32 %v757_v61, %v756_v59 }
 0x39e   :  { %v749_v0 = vadd.f32 %v748_v62, %v1112_v35  ;;  %v759_v6 = vadd.f32 %v758_v63, %v1114_v36 }
 0x3a0   :  { %v751_v50 = vadd.f32 %v750_v3, %v749_v0  ;;  %v761_v8 = vadd.f32 %v760_v9, %v759_v6 }
 0x3a2   :  { %v762_v12 = vmul.f32 0.5, %v751_v50  ;;  %v764_v53 = vmul.f32 0.5, %v761_v8  ;;  %v834_v41 = vmul.f32 2.0, %v751_v50  ;;  %v841_v42 = vmul.f32 2.0, %v761_v8 }
 0x3a4   :  { %v763_v54 = vadd.f32 %v762_v12, %v1342_v1  ;;  %v765_v13 = vadd.f32 %v764_v53, %v1345_v2  ;;  %v1377_v16 = vadd.f32 %v834_v41, %v714_v37  ;;  %v1379_v44 = vadd.f32 %v841_v42, %v724_v38 }
 0x3a6   :  { %v769_v45 = vrot.slane %v763_v54, %v1079_v7  ;;  %v775_v17 = vrot.slane %v765_v13, %v1079_v7  ;;  %v787_v26 = vmul.f32 %v763_v54, %v1110_v32  ;;  %v797_v5 = vmul.f32 %v765_v13, %v1110_v32 }
 0x3a8   :  { %v770_v18 = vmul.f32 %v769_v45, %v1093_v11  ;;  %v776_v24 = vmul.f32 %v775_v17, %v1100_v15 }
 0x3aa   :  { %v771_v23 = vadd.f32 %v770_v18, %v1098_v14 }
 0x3ac   :  { %v777_v25 = vadd.f32 %v776_v24, %v771_v23 }
 0x3ae   :  { %959 = vtanh.f32 %v777_v25 }
 0x3bb   :  { %v960_v28 = vpop.eup %959 }
 0x3bc   :  { %v779_v29 = vmul.f32 %v960_v28, %v1104_v19  ;;  %v789_v30 = vmul.f32 %v960_v28, %v1106_v20 }
 0x3be   :  { %v780_v31 = vrot.slane %v779_v29, 4  ;;  %v790_v33 = vrot.slane %v789_v30, 4 }
 0x3c0   :  { %v781_v34 = vadd.f32 %v780_v31, %v779_v29  ;;  %v791_v37 = vadd.f32 %v790_v33, %v789_v30  ;;  %v848_v29 = vstv %s907_s10  ;;  %v856_v30 = vstv %s909_s12 }
 0x3c1   :  { %v858_v31 = vstv %s910_s13 }
 0x3c2   :  { %v782_v38 = vrot.slane %v781_v34, 2  ;;  %v792_v39 = vrot.slane %v791_v37, 2 }
 0x3c4   :  { %v783_v40 = vadd.f32 %v782_v38, %v781_v34  ;;  %v793_v43 = vadd.f32 %v792_v39, %v791_v37  ;;  %v861_v39 = vstv %s912_s15 }
 0x3c6   :  { %v784_v46 = vrot.slane %v783_v40, 1  ;;  %v794_v47 = vrot.slane %v793_v43, 1 }
 0x3c8   :  { %v785_v21 = vadd.f32 %v784_v46, %v783_v40  ;;  %v795_v22 = vadd.f32 %v794_v47, %v793_v43 }
 0x3ca   :  { %v786_v48 = vadd.f32 %v785_v21, %v1112_v35  ;;  %v796_v4 = vadd.f32 %v795_v22, %v1114_v36 }
 0x3cc   :  { %v788_v27 = vadd.f32 %v787_v26, %v786_v48  ;;  %v798_v49 = vadd.f32 %v797_v5, %v796_v4 }
 0x3ce   :  { %v799_v10 = vadd.f32 %v788_v27, %v1342_v1  ;;  %v800_v51 = vadd.f32 %v798_v49, %v1345_v2  ;;  %v836_v53 = vmul.f32 2.0, %v788_v27  ;;  %v843_v41 = vmul.f32 2.0, %v798_v49 }
 0x3d0   :  { %v804_v52 = vrot.slane %v799_v10, %v1079_v7  ;;  %v810_v55 = vrot.slane %v800_v51, %v1079_v7  ;;  %v832_v54 = vmul.f32 %v800_v51, %v1110_v32  ;;  %v837_v17 = vadd.f32 %v836_v53, %v1377_v16 }
 0x3d1   :  { %v844_v18 = vadd.f32 %v843_v41, %v1379_v44  ;;  %v853_v16 = vstv %s911_s14 }
 0x3d2   :  { %v805_v56 = vmul.f32 %v804_v52, %v1093_v11  ;;  %v811_v58 = vmul.f32 %v810_v55, %v1100_v15 }
 0x3d4   :  { %v806_v57 = vadd.f32 %v805_v56, %v1098_v14 }
 0x3d6   :  { %v812_v59 = vadd.f32 %v811_v58, %v806_v57 }
 0x3d8   :  { %961 = vtanh.f32 %v812_v59 }
 0x3e5   :  { %v962_v60 = vpop.eup %961 }
 0x3e6   :  { %v814_v61 = vmul.f32 %v962_v60, %v1104_v19  ;;  %v824_v62 = vmul.f32 %v962_v60, %v1106_v20  ;;  %v822_v20 = vmul.f32 %v799_v10, %v1110_v32 }
 0x3e8   :  { %v815_v63 = vrot.slane %v814_v61, 4  ;;  %v825_v0 = vrot.slane %v824_v62, 4 }
 0x3ea   :  { %v816_v3 = vadd.f32 %v815_v63, %v814_v61  ;;  %v826_v6 = vadd.f32 %v825_v0, %v824_v62 }
 0x3ec   :  { %v817_v9 = vrot.slane %v816_v3, 2  ;;  %v827_v50 = vrot.slane %v826_v6, 2 }
 0x3ee   :  { %v818_v7 = vadd.f32 %v817_v9, %v816_v3  ;;  %v828_v8 = vadd.f32 %v827_v50, %v826_v6 }
 0x3f0   :  { %v819_v11 = vrot.slane %v818_v7, 1  ;;  %v829_v14 = vrot.slane %v828_v8, 1 }
 0x3f2   :  { %v820_v15 = vadd.f32 %v819_v11, %v818_v7  ;;  %v830_v12 = vadd.f32 %v829_v14, %v828_v8 }
 0x3f4   :  { %v821_v19 = vadd.f32 %v820_v15, %v1112_v35  ;;  %v831_v42 = vadd.f32 %v830_v12, %v1114_v36  ;;  %v850_v35 = vstv %s908_s11 }
 0x3f6   :  { %v823_v13 = vadd.f32 %v822_v20, %v821_v19  ;;  %v833_v45 = vadd.f32 %v832_v54, %v831_v42 }
 0x3f8   :  { %v838_v23 = vadd.f32 %v837_v17, %v823_v13  ;;  %v845_v24 = vadd.f32 %v844_v18, %v833_v45 }
 0x3fa   :  { %v839_v25 = vmul.f32 0.16666667, %v838_v23  ;;  %v846_v28 = vmul.f32 0.16666667, %v845_v24 }
 0x3fc   :  { %v840_v36 = vadd.f32 %v839_v25, %v1342_v1  ;;  %v847_v32 = vadd.f32 %v846_v28, %v1345_v2 }
 0x3fe   :  { %v849_v33 = vmul.f32 %v848_v29, %v840_v36  ;;  %v851_v34 = vmul.f32 %v850_v35, %v847_v32  ;;  %v857_v37 = vmul.f32 %v856_v30, %v840_v36  ;;  %v859_v38 = vmul.f32 %v858_v31, %v847_v32 }
 0x400   :  { %v852_v44 = vadd.f32 %v851_v34, %v849_v33  ;;  %v860_v40 = vadd.f32 %v859_v38, %v857_v37 }
 0x402   :  { %v854_v43 = vadd.f32 %v853_v16, %v852_v44  ;;  %v862_v46 = vadd.f32 %v861_v39, %v860_v40 }
 0x404   :  { %855 = vst [vmem:[#allocation4] sm:$0x1] %v854_v43  ;;  %863 = vst [vmem:[#allocation4 + $0x1] sm:$0x1] %v862_v46  ;;  %v864_v47 = vmax.f32 %v854_v43, %v862_v46 }
 0x405   :  { %992 = shalt.err (!%p989_p9)
}
 0x406   :  { %886 = dma.vmem_to_hbm [thread:$0]  %s884_s17, 32, %s1420_s5, [#allocation5]   ;;  %v865_v1 = vsub.f32 %v854_v43, %v864_v47  ;;  %v868_v2 = vsub.f32 %v862_v46, %v864_v47 }
 0x407   :  { %s1031_s21 = smov [#allocation6]  }
 0x408   :  { %v866_v21 = vmul.f32 1.442695, %v865_v1  ;;  %v869_v22 = vmul.f32 1.442695, %v868_v2  ;;  %s893_s22 = sshll.u32 %s1031_s21, 4  ;;  %s894_s22 = int_to_ptr.vmem [resolvable:$true] %s893_s22 }
 0x409   :  { %s1001_s23 = scalar_lea.vmem %s894_s22, 32  ;;  %p1006_p11 = scmp.lt.s32.totalorder %s894_s22, %s894_s22 }
 0x40a   :  { %963 = vpow2.f32 %v866_v21  ;;  %p1002_p10 = scmp.ne.s32.totalorder %s894_s22, %s1001_s23  ;;  %p1007_p12 = scmp.lt.s32.totalorder %s1001_s23, %s1001_s23 }
 0x40b   :  { %965 = vpow2.f32 %v869_v22 }
 0x40c   :  { %p1008_p13 = por %p1007_p12, %p1006_p11 }
 0x40e   :  { %p1009_p0 = pnand %p1008_p13, %p1002_p10 }
 0x417   :  { %v964_v48 = vpop.eup %963 }
 0x418   :  { %v966_v26 = vpop.eup %965 }
 0x419   :  { %v871_v4 = vadd.f32 %v966_v26, %v964_v48 }
 0x41b   :  { %967 = vrcp.f32 %v871_v4 }
 0x428   :  { %v968_v5 = vpop.eup %967 }
 0x429   :  { %v873_v27 = vmul.f32 %v968_v5, %v964_v48  ;;  %v875_v49 = vmul.f32 %v968_v5, %v966_v26 }
 0x42b   :  { %874 = vst [vmem:[#allocation6] sm:$0x1] %v873_v27  ;;  %876 = vst [vmem:[#allocation6 + $0x1] sm:$0x1] %v875_v49 }
 0x42c   :  { %1012 = shalt.err (!%p1009_p0)
}
 0x42d   :  { %896 = dma.vmem_to_hbm [thread:$0]  %s894_s22, 32, %s1421_s6, [#allocation7]  }
 0x42e   :  { %1023 = dma.done.wait [#allocation5], 32  }
 0x42f   :  { %1024 = vsyncadd [#allocation5], 4294967264 }
 0x430   :  { %1025 = dma.done.wait [#allocation7], 32  }
 0x431   :  { %1026 = vsyncadd [#allocation7], 4294967264 }
 0x432   :  { %903 = vsyncpa [#allocation5], 1 }
 0x433   :  { %904 = vsyncpa [#allocation7], 1 }

</bundles_post_ra>
